<compile_context>
chip_gen: v7x
topology: tpu7x:2x2x1
jax: 0.10.0
libtpu: 0.0.40
codegen_flags: <defaults>
</compile_context>

<pallas_src>
import functools
import math

import jax
import jax.numpy as jnp
from jax import lax
from jax.experimental import pallas as pl
from jax.experimental.pallas import tpu as pltpu


def _sepconv_kernel(x_ref, wdw_ref, bdw_ref, wpw_ref, bpw_ref, o_ref, xpad_ref,
                    *, C_in, scale, K, stride, padding, H, W, H_out, W_out,
                    Cout, eps):
    """One batch element per grid step.

    x_ref:    (1, C_in, H, W)        input image (NCHW block), VMEM
    wdw_ref:  (K*K*Cm,)              depthwise weights, SMEM, index (kh*K+kw)*Cm + j
    bdw_ref:  (Cm,)                  depthwise bias, SMEM
    wpw_ref:  (Cout*Cm,)             pointwise weights, SMEM, index co*Cm + j
    bpw_ref:  (Cout,)                pointwise bias, SMEM
    o_ref:    (1, Cout, H_out, W_out) output block (already NCHW)
    xpad_ref: (C_in, H+2p, W+2p)     VMEM scratch for zero padding
    """
    Cm = C_in * scale
    h_span = (H_out - 1) * stride + 1
    w_span = (W_out - 1) * stride + 1
    inv_hw = 1.0 / float(H_out * W_out)

    # ---- zero-pad into VMEM scratch (padding fused in-kernel, no HBM pad pass) ----
    if padding > 0:
        xpad_ref[...] = jnp.zeros_like(xpad_ref)
    xpad_ref[:, padding:padding + H, padding:padding + W] = \
        x_ref[0].astype(jnp.float32)

    # ---- depthwise conv + InstanceNorm, per depthwise output channel ----
    # Output channel j = c*scale + s uses input channel c (groups=C_in semantics),
    # so the scale_factor replication is done via weight indexing, not data copies.
    normed = []
    for c in range(C_in):
        xc = xpad_ref[c]                                      # (Hp, Wp)
        # hoist the row slice out of the tap loop: K slices instead of K*K
        rows = [xc[kh:kh + h_span:stride, :] for kh in range(K)]

        accs = [jnp.zeros((H_out, W_out), jnp.float32) for _ in range(scale)]
        for kh in range(K):
            for kw in range(K):
                patch = rows[kh][:, kw:kw + w_span:stride]    # (H_out, W_out)
                t = kh * K + kw
                for s in range(scale):
                    accs[s] = accs[s] + patch * wdw_ref[t * Cm + c * scale + s]

        for s in range(scale):
            j = c * scale + s
            acc = accs[s] + bdw_ref[j]
            # one-pass stats: var = E[x^2] - E[x]^2 (biased, matches InstanceNorm2d)
            mean = jnp.sum(acc, keepdims=True) * inv_hw        # (1, 1)
            meansq = jnp.sum(acc * acc, keepdims=True) * inv_hw
            var = meansq - mean * mean
            normed.append((acc - mean) * lax.rsqrt(var + eps))

    # ---- pointwise 1x1 conv as fused VPU FMA over channels (MXU skipped:
    # a (HW, Cm) x (Cm, Cout) contraction at Cm=4 / Cout=8 wastes the MXU) ----
    for co in range(Cout):
        y = jnp.zeros((H_out, W_out), jnp.float32)
        for j in range(Cm):
            y = y + normed[j] * wpw_ref[co * Cm + j]
        y = y + bpw_ref[co]
        o_ref[0, co, :, :] = y.astype(o_ref.dtype)


def separable_conv2d(x_nchw, w_dw, b_dw, w_pw, b_pw, *, stride=1, padding=0,
                     scale_factor=1, eps=1e-5):
    """Pallas SeparableConv2d forward.

    x_nchw: (N, C_in, H, W)
    w_dw:   (C_in*scale, 1, K, K)   depthwise weights (torch layout, groups=C_in)
    b_dw:   (C_in*scale,)
    w_pw:   (C_out, C_in*scale, 1, 1)
    b_pw:   (C_out,)
    returns (N, C_out, H_out, W_out)
    """
    N, C_in, H, W = x_nchw.shape
    Cm = C_in * scale_factor
    Cout = w_pw.shape[0]
    K = w_dw.shape[-1]
    H_out = (H + 2 * padding - K) // stride + 1
    W_out = (W + 2 * padding - K) // stride + 1
    Hp, Wp = H + 2 * padding, W + 2 * padding

    # Input goes straight to the kernel in NCHW: no transpose / pad / repeat passes.
    x = x_nchw.astype(jnp.float32)

    # Tiny weight re-layouts only (negligible, not full-tensor HBM passes).
    # depthwise: (Cm,1,K,K) -> flat [(kh*K+kw)*Cm + j]
    wdw_flat = jnp.transpose(w_dw.reshape(Cm, K * K), (1, 0)).reshape(-1)
    wdw_flat = wdw_flat.astype(jnp.float32)
    bdw_flat = b_dw.reshape(-1).astype(jnp.float32)
    # pointwise: (Cout,Cm,1,1) -> flat [co*Cm + j]
    wpw_flat = w_pw.reshape(-1).astype(jnp.float32)
    bpw_flat = b_pw.reshape(-1).astype(jnp.float32)

    kernel = functools.partial(
        _sepconv_kernel, C_in=C_in, scale=scale_factor, K=K, stride=stride,
        padding=padding, H=H, W=W, H_out=H_out, W_out=W_out, Cout=Cout, eps=eps)

    out = pl.pallas_call(
        kernel,
        out_shape=jax.ShapeDtypeStruct((N, Cout, H_out, W_out), jnp.float32),
        grid_spec=pltpu.PrefetchScalarGridSpec(
            num_scalar_prefetch=0,
            grid=(N,),
            in_specs=[
                pl.BlockSpec((1, C_in, H, W), lambda n: (n, 0, 0, 0)),
                pl.BlockSpec(memory_space=pltpu.MemorySpace.SMEM),  # wdw
                pl.BlockSpec(memory_space=pltpu.MemorySpace.SMEM),  # bdw
                pl.BlockSpec(memory_space=pltpu.MemorySpace.SMEM),  # wpw
                pl.BlockSpec(memory_space=pltpu.MemorySpace.SMEM),  # bpw
            ],
            out_specs=pl.BlockSpec((1, Cout, H_out, W_out),
                                   lambda n: (n, 0, 0, 0)),
            scratch_shapes=[pltpu.VMEM((C_in, Hp, Wp), jnp.float32)],
        ),
        compiler_params=pltpu.CompilerParams(
            dimension_semantics=("parallel",)),
    )(x, wdw_flat, bdw_flat, wpw_flat, bpw_flat)

    return out  # already NCHW — no exit transpose


def _reference(x_nchw, w_dw, b_dw, w_pw, b_pw, *, stride, padding,
               scale_factor, eps=1e-5):
    """Pure-JAX reference matching the PyTorch module."""
    C_in = x_nchw.shape[1]
    y = jax.lax.conv_general_dilated(
        x_nchw, w_dw, window_strides=(stride, stride),
        padding=((padding, padding), (padding, padding)),
        feature_group_count=C_in,
        dimension_numbers=("NCHW", "OIHW", "NCHW"))
    y = y + b_dw[None, :, None, None]
    mean = jnp.mean(y, axis=(2, 3), keepdims=True)
    var = jnp.mean((y - mean) ** 2, axis=(2, 3), keepdims=True)
    y = (y - mean) / jnp.sqrt(var + eps)
    z = jax.lax.conv_general_dilated(
        y, w_pw, window_strides=(1, 1), padding="VALID",
        dimension_numbers=("NCHW", "OIHW", "NCHW"))
    return z + b_pw[None, :, None, None]


if __name__ == "__main__":
    # Module config: SeparableConv2d(in_channels=4, out_channels=8, kernel_size=3,
    #                                stride=1, padding=1, scale_factor=1)
    N, C_in, H, W = 2, 4, 16, 16
    C_out, K, stride, padding, scale = 8, 3, 1, 1, 1
    Cm = C_in * scale

    key = jax.random.PRNGKey(0)
    kx, k1, k2, k3, k4 = jax.random.split(key, 5)

    x = jax.random.normal(kx, (N, C_in, H, W), dtype=jnp.float32)

    # Deterministic param init (PyTorch-like uniform bounds).
    fan_dw = 1 * K * K
    bound_dw = 1.0 / math.sqrt(fan_dw)
    w_dw = jax.random.uniform(k1, (Cm, 1, K, K), jnp.float32, -bound_dw, bound_dw)
    b_dw = jax.random.uniform(k2, (Cm,), jnp.float32, -bound_dw, bound_dw)

    fan_pw = Cm
    bound_pw = 1.0 / math.sqrt(fan_pw)
    w_pw = jax.random.uniform(k3, (C_out, Cm, 1, 1), jnp.float32, -bound_pw, bound_pw)
    b_pw = jax.random.uniform(k4, (C_out,), jnp.float32, -bound_pw, bound_pw)

    out = separable_conv2d(x, w_dw, b_dw, w_pw, b_pw,
                           stride=stride, padding=padding, scale_factor=scale)
    out = jax.block_until_ready(out)

    ref = _reference(x, w_dw, b_dw, w_pw, b_pw,
                     stride=stride, padding=padding, scale_factor=scale)
    assert out.shape == (N, C_out, H, W), out.shape
    assert jnp.allclose(out, ref, rtol=1e-3, atol=1e-3), float(
        jnp.max(jnp.abs(out - ref)))

    print("KERNEL_OK")
</pallas_src>

<mosaic_0001>
module attributes {stable_mosaic.version = 11 : i64} {
  func.func @_sepconv_kernel(%arg0: i32, %arg1: memref<1x4x16x16xf32, #tpu.memory_space<vmem>>, %arg2: memref<36xf32, #tpu.memory_space<smem>>, %arg3: memref<4xf32, #tpu.memory_space<smem>>, %arg4: memref<32xf32, #tpu.memory_space<smem>>, %arg5: memref<8xf32, #tpu.memory_space<smem>>, %arg6: memref<1x8x16x16xf32, #tpu.memory_space<vmem>>, %arg7: memref<4x18x18xf32, #tpu.memory_space<vmem>>) attributes {dimension_semantics = [#tpu.dimension_semantics<parallel>], iteration_bounds = array<i64: 2>, scalar_prefetch = 0 : i64, scratch_operands = 1 : i64, tpu.core_type = #tpu.core_type<tc>, window_params = [{transform_indices = @transform_0, window_bounds = array<i64: 1, 4, 16, 16>}, {transform_indices = @transform_1, window_bounds = array<i64: 36>}, {transform_indices = @transform_2, window_bounds = array<i64: 4>}, {transform_indices = @transform_3, window_bounds = array<i64: 32>}, {transform_indices = @transform_4, window_bounds = array<i64: 8>}, {transform_indices = @transform_5, window_bounds = array<i64: 1, 8, 16, 16>}]} {
    %cst = arith.constant 0.000000e+00 : f32
    %0 = vector.broadcast %cst : f32 to vector<4x18x18xf32>
    %c0 = arith.constant 0 : index
    %c0_0 = arith.constant 0 : index
    %c0_1 = arith.constant 0 : index
    %1 = vector.load %arg7[%c0, %c0_0, %c0_1] : memref<4x18x18xf32, #tpu.memory_space<vmem>>, vector<4x18x18xf32>
    tpu.vector_store %arg7[%c0, %c0_0, %c0_1], %0 {strides = array<i32>} : memref<4x18x18xf32, #tpu.memory_space<vmem>>, vector<4x18x18xf32>,
    %c0_2 = arith.constant 0 : index
    %c0_3 = arith.constant 0 : index
    %c0_4 = arith.constant 0 : index
    %c0_5 = arith.constant 0 : index
    %2 = vector.load %arg1[%c0_2, %c0_3, %c0_4, %c0_5] : memref<1x4x16x16xf32, #tpu.memory_space<vmem>>, vector<1x4x16x16xf32>
    %3 = vector.shape_cast %2 : vector<1x4x16x16xf32> to vector<4x16x16xf32>
    %c0_6 = arith.constant 0 : index
    %c1 = arith.constant 1 : index
    %c1_7 = arith.constant 1 : index
    %4 = vector.load %arg7[%c0_6, %c1, %c1_7] : memref<4x18x18xf32, #tpu.memory_space<vmem>>, vector<4x16x16xf32>
    tpu.vector_store %arg7[%c0_6, %c1, %c1_7], %3 {strides = array<i32>} : memref<4x18x18xf32, #tpu.memory_space<vmem>>, vector<4x16x16xf32>,
    %c0_8 = arith.constant 0 : index
    %c0_9 = arith.constant 0 : index
    %c0_10 = arith.constant 0 : index
    %5 = vector.load %arg7[%c0_8, %c0_9, %c0_10] : memref<4x18x18xf32, #tpu.memory_space<vmem>>, vector<1x18x18xf32>
    %6 = vector.shape_cast %5 : vector<1x18x18xf32> to vector<18x18xf32>
    %7 = vector.extract_strided_slice %6 {offsets = [0, 0], sizes = [16, 18], strides = [1, 1]} : vector<18x18xf32> to vector<16x18xf32>
    %8 = vector.extract_strided_slice %6 {offsets = [1, 0], sizes = [16, 18], strides = [1, 1]} : vector<18x18xf32> to vector<16x18xf32>
    %9 = vector.extract_strided_slice %6 {offsets = [2, 0], sizes = [16, 18], strides = [1, 1]} : vector<18x18xf32> to vector<16x18xf32>
    %cst_11 = arith.constant 0.000000e+00 : f32
    %10 = vector.broadcast %cst_11 : f32 to vector<16x16xf32>
    %11 = vector.extract_strided_slice %7 {offsets = [0, 0], sizes = [16, 16], strides = [1, 1]} : vector<16x18xf32> to vector<16x16xf32>
    %c0_12 = arith.constant 0 : index
    %12 = memref.load %arg2[%c0_12] : memref<36xf32, #tpu.memory_space<smem>>
    %13 = vector.broadcast %12 : f32 to vector<16x16xf32>
    %14 = arith.mulf %11, %13 : vector<16x16xf32>
    %15 = arith.addf %10, %14 : vector<16x16xf32>
    %16 = vector.extract_strided_slice %7 {offsets = [0, 1], sizes = [16, 16], strides = [1, 1]} : vector<16x18xf32> to vector<16x16xf32>
    %c4 = arith.constant 4 : index
    %17 = memref.load %arg2[%c4] : memref<36xf32, #tpu.memory_space<smem>>
    %18 = vector.broadcast %17 : f32 to vector<16x16xf32>
    %19 = arith.mulf %16, %18 : vector<16x16xf32>
    %20 = arith.addf %15, %19 : vector<16x16xf32>
    %21 = vector.extract_strided_slice %7 {offsets = [0, 2], sizes = [16, 16], strides = [1, 1]} : vector<16x18xf32> to vector<16x16xf32>
    %c8 = arith.constant 8 : index
    %22 = memref.load %arg2[%c8] : memref<36xf32, #tpu.memory_space<smem>>
    %23 = vector.broadcast %22 : f32 to vector<16x16xf32>
    %24 = arith.mulf %21, %23 : vector<16x16xf32>
    %25 = arith.addf %20, %24 : vector<16x16xf32>
    %26 = vector.extract_strided_slice %8 {offsets = [0, 0], sizes = [16, 16], strides = [1, 1]} : vector<16x18xf32> to vector<16x16xf32>
    %c12 = arith.constant 12 : index
    %27 = memref.load %arg2[%c12] : memref<36xf32, #tpu.memory_space<smem>>
    %28 = vector.broadcast %27 : f32 to vector<16x16xf32>
    %29 = arith.mulf %26, %28 : vector<16x16xf32>
    %30 = arith.addf %25, %29 : vector<16x16xf32>
    %31 = vector.extract_strided_slice %8 {offsets = [0, 1], sizes = [16, 16], strides = [1, 1]} : vector<16x18xf32> to vector<16x16xf32>
    %c16 = arith.constant 16 : index
    %32 = memref.load %arg2[%c16] : memref<36xf32, #tpu.memory_space<smem>>
    %33 = vector.broadcast %32 : f32 to vector<16x16xf32>
    %34 = arith.mulf %31, %33 : vector<16x16xf32>
    %35 = arith.addf %30, %34 : vector<16x16xf32>
    %36 = vector.extract_strided_slice %8 {offsets = [0, 2], sizes = [16, 16], strides = [1, 1]} : vector<16x18xf32> to vector<16x16xf32>
    %c20 = arith.constant 20 : index
    %37 = memref.load %arg2[%c20] : memref<36xf32, #tpu.memory_space<smem>>
    %38 = vector.broadcast %37 : f32 to vector<16x16xf32>
    %39 = arith.mulf %36, %38 : vector<16x16xf32>
    %40 = arith.addf %35, %39 : vector<16x16xf32>
    %41 = vector.extract_strided_slice %9 {offsets = [0, 0], sizes = [16, 16], strides = [1, 1]} : vector<16x18xf32> to vector<16x16xf32>
    %c24 = arith.constant 24 : index
    %42 = memref.load %arg2[%c24] : memref<36xf32, #tpu.memory_space<smem>>
    %43 = vector.broadcast %42 : f32 to vector<16x16xf32>
    %44 = arith.mulf %41, %43 : vector<16x16xf32>
    %45 = arith.addf %40, %44 : vector<16x16xf32>
    %46 = vector.extract_strided_slice %9 {offsets = [0, 1], sizes = [16, 16], strides = [1, 1]} : vector<16x18xf32> to vector<16x16xf32>
    %c28 = arith.constant 28 : index
    %47 = memref.load %arg2[%c28] : memref<36xf32, #tpu.memory_space<smem>>
    %48 = vector.broadcast %47 : f32 to vector<16x16xf32>
    %49 = arith.mulf %46, %48 : vector<16x16xf32>
    %50 = arith.addf %45, %49 : vector<16x16xf32>
    %51 = vector.extract_strided_slice %9 {offsets = [0, 2], sizes = [16, 16], strides = [1, 1]} : vector<16x18xf32> to vector<16x16xf32>
    %c32 = arith.constant 32 : index
    %52 = memref.load %arg2[%c32] : memref<36xf32, #tpu.memory_space<smem>>
    %53 = vector.broadcast %52 : f32 to vector<16x16xf32>
    %54 = arith.mulf %51, %53 : vector<16x16xf32>
    %55 = arith.addf %50, %54 : vector<16x16xf32>
    %c0_13 = arith.constant 0 : index
    %56 = memref.load %arg3[%c0_13] : memref<4xf32, #tpu.memory_space<smem>>
    %57 = vector.broadcast %56 : f32 to vector<16x16xf32>
    %58 = arith.addf %55, %57 : vector<16x16xf32>
    %59 = vector.shape_cast %58 : vector<16x16xf32> to vector<1x16x16xf32>
    %cst_14 = arith.constant dense<0.000000e+00> : vector<1xf32>
    %60 = vector.multi_reduction <add>, %59, %cst_14 [1, 2] : vector<1x16x16xf32> to vector<1xf32>
    %61 = vector.shape_cast %60 : vector<1xf32> to vector<1x1x1xf32>
    %62 = vector.extract %61[0, 0, 0] : f32 from vector<1x1x1xf32>
    %63 = vector.broadcast %62 : f32 to vector<1x1xf32>
    %cst_15 = arith.constant 3.906250e-03 : f32
    %64 = vector.broadcast %cst_15 : f32 to vector<1x1xf32>
    %65 = arith.mulf %63, %64 : vector<1x1xf32>
    %66 = arith.mulf %58, %58 : vector<16x16xf32>
    %67 = vector.shape_cast %66 : vector<16x16xf32> to vector<1x16x16xf32>
    %cst_16 = arith.constant dense<0.000000e+00> : vector<1xf32>
    %68 = vector.multi_reduction <add>, %67, %cst_16 [1, 2] : vector<1x16x16xf32> to vector<1xf32>
    %69 = vector.shape_cast %68 : vector<1xf32> to vector<1x1x1xf32>
    %70 = vector.extract %69[0, 0, 0] : f32 from vector<1x1x1xf32>
    %71 = vector.broadcast %70 : f32 to vector<1x1xf32>
    %cst_17 = arith.constant 3.906250e-03 : f32
    %72 = vector.broadcast %cst_17 : f32 to vector<1x1xf32>
    %73 = arith.mulf %71, %72 : vector<1x1xf32>
    %74 = arith.mulf %65, %65 : vector<1x1xf32>
    %75 = arith.subf %73, %74 : vector<1x1xf32>
    %76 = vector.broadcast %65 : vector<1x1xf32> to vector<16x16xf32>
    %77 = arith.subf %58, %76 : vector<16x16xf32>
    %cst_18 = arith.constant 9.99999974E-6 : f32
    %78 = vector.broadcast %cst_18 : f32 to vector<1x1xf32>
    %79 = arith.addf %75, %78 : vector<1x1xf32>
    %80 = math.rsqrt %79 : vector<1x1xf32>
    %81 = vector.broadcast %80 : vector<1x1xf32> to vector<16x16xf32>
    %82 = arith.mulf %77, %81 : vector<16x16xf32>
    %c1_19 = arith.constant 1 : index
    %c0_20 = arith.constant 0 : index
    %c0_21 = arith.constant 0 : index
    %83 = vector.load %arg7[%c1_19, %c0_20, %c0_21] : memref<4x18x18xf32, #tpu.memory_space<vmem>>, vector<1x18x18xf32>
    %84 = vector.shape_cast %83 : vector<1x18x18xf32> to vector<18x18xf32>
    %85 = vector.extract_strided_slice %84 {offsets = [0, 0], sizes = [16, 18], strides = [1, 1]} : vector<18x18xf32> to vector<16x18xf32>
    %86 = vector.extract_strided_slice %84 {offsets = [1, 0], sizes = [16, 18], strides = [1, 1]} : vector<18x18xf32> to vector<16x18xf32>
    %87 = vector.extract_strided_slice %84 {offsets = [2, 0], sizes = [16, 18], strides = [1, 1]} : vector<18x18xf32> to vector<16x18xf32>
    %cst_22 = arith.constant 0.000000e+00 : f32
    %88 = vector.broadcast %cst_22 : f32 to vector<16x16xf32>
    %89 = vector.extract_strided_slice %85 {offsets = [0, 0], sizes = [16, 16], strides = [1, 1]} : vector<16x18xf32> to vector<16x16xf32>
    %c1_23 = arith.constant 1 : index
    %90 = memref.load %arg2[%c1_23] : memref<36xf32, #tpu.memory_space<smem>>
    %91 = vector.broadcast %90 : f32 to vector<16x16xf32>
    %92 = arith.mulf %89, %91 : vector<16x16xf32>
    %93 = arith.addf %88, %92 : vector<16x16xf32>
    %94 = vector.extract_strided_slice %85 {offsets = [0, 1], sizes = [16, 16], strides = [1, 1]} : vector<16x18xf32> to vector<16x16xf32>
    %c5 = arith.constant 5 : index
    %95 = memref.load %arg2[%c5] : memref<36xf32, #tpu.memory_space<smem>>
    %96 = vector.broadcast %95 : f32 to vector<16x16xf32>
    %97 = arith.mulf %94, %96 : vector<16x16xf32>
    %98 = arith.addf %93, %97 : vector<16x16xf32>
    %99 = vector.extract_strided_slice %85 {offsets = [0, 2], sizes = [16, 16], strides = [1, 1]} : vector<16x18xf32> to vector<16x16xf32>
    %c9 = arith.constant 9 : index
    %100 = memref.load %arg2[%c9] : memref<36xf32, #tpu.memory_space<smem>>
    %101 = vector.broadcast %100 : f32 to vector<16x16xf32>
    %102 = arith.mulf %99, %101 : vector<16x16xf32>
    %103 = arith.addf %98, %102 : vector<16x16xf32>
    %104 = vector.extract_strided_slice %86 {offsets = [0, 0], sizes = [16, 16], strides = [1, 1]} : vector<16x18xf32> to vector<16x16xf32>
    %c13 = arith.constant 13 : index
    %105 = memref.load %arg2[%c13] : memref<36xf32, #tpu.memory_space<smem>>
    %106 = vector.broadcast %105 : f32 to vector<16x16xf32>
    %107 = arith.mulf %104, %106 : vector<16x16xf32>
    %108 = arith.addf %103, %107 : vector<16x16xf32>
    %109 = vector.extract_strided_slice %86 {offsets = [0, 1], sizes = [16, 16], strides = [1, 1]} : vector<16x18xf32> to vector<16x16xf32>
    %c17 = arith.constant 17 : index
    %110 = memref.load %arg2[%c17] : memref<36xf32, #tpu.memory_space<smem>>
    %111 = vector.broadcast %110 : f32 to vector<16x16xf32>
    %112 = arith.mulf %109, %111 : vector<16x16xf32>
    %113 = arith.addf %108, %112 : vector<16x16xf32>
    %114 = vector.extract_strided_slice %86 {offsets = [0, 2], sizes = [16, 16], strides = [1, 1]} : vector<16x18xf32> to vector<16x16xf32>
    %c21 = arith.constant 21 : index
    %115 = memref.load %arg2[%c21] : memref<36xf32, #tpu.memory_space<smem>>
    %116 = vector.broadcast %115 : f32 to vector<16x16xf32>
    %117 = arith.mulf %114, %116 : vector<16x16xf32>
    %118 = arith.addf %113, %117 : vector<16x16xf32>
    %119 = vector.extract_strided_slice %87 {offsets = [0, 0], sizes = [16, 16], strides = [1, 1]} : vector<16x18xf32> to vector<16x16xf32>
    %c25 = arith.constant 25 : index
    %120 = memref.load %arg2[%c25] : memref<36xf32, #tpu.memory_space<smem>>
    %121 = vector.broadcast %120 : f32 to vector<16x16xf32>
    %122 = arith.mulf %119, %121 : vector<16x16xf32>
    %123 = arith.addf %118, %122 : vector<16x16xf32>
    %124 = vector.extract_strided_slice %87 {offsets = [0, 1], sizes = [16, 16], strides = [1, 1]} : vector<16x18xf32> to vector<16x16xf32>
    %c29 = arith.constant 29 : index
    %125 = memref.load %arg2[%c29] : memref<36xf32, #tpu.memory_space<smem>>
    %126 = vector.broadcast %125 : f32 to vector<16x16xf32>
    %127 = arith.mulf %124, %126 : vector<16x16xf32>
    %128 = arith.addf %123, %127 : vector<16x16xf32>
    %129 = vector.extract_strided_slice %87 {offsets = [0, 2], sizes = [16, 16], strides = [1, 1]} : vector<16x18xf32> to vector<16x16xf32>
    %c33 = arith.constant 33 : index
    %130 = memref.load %arg2[%c33] : memref<36xf32, #tpu.memory_space<smem>>
    %131 = vector.broadcast %130 : f32 to vector<16x16xf32>
    %132 = arith.mulf %129, %131 : vector<16x16xf32>
    %133 = arith.addf %128, %132 : vector<16x16xf32>
    %c1_24 = arith.constant 1 : index
    %134 = memref.load %arg3[%c1_24] : memref<4xf32, #tpu.memory_space<smem>>
    %135 = vector.broadcast %134 : f32 to vector<16x16xf32>
    %136 = arith.addf %133, %135 : vector<16x16xf32>
    %137 = vector.shape_cast %136 : vector<16x16xf32> to vector<1x16x16xf32>
    %cst_25 = arith.constant dense<0.000000e+00> : vector<1xf32>
    %138 = vector.multi_reduction <add>, %137, %cst_25 [1, 2] : vector<1x16x16xf32> to vector<1xf32>
    %139 = vector.shape_cast %138 : vector<1xf32> to vector<1x1x1xf32>
    %140 = vector.extract %139[0, 0, 0] : f32 from vector<1x1x1xf32>
    %141 = vector.broadcast %140 : f32 to vector<1x1xf32>
    %cst_26 = arith.constant 3.906250e-03 : f32
    %142 = vector.broadcast %cst_26 : f32 to vector<1x1xf32>
    %143 = arith.mulf %141, %142 : vector<1x1xf32>
    %144 = arith.mulf %136, %136 : vector<16x16xf32>
    %145 = vector.shape_cast %144 : vector<16x16xf32> to vector<1x16x16xf32>
    %cst_27 = arith.constant dense<0.000000e+00> : vector<1xf32>
    %146 = vector.multi_reduction <add>, %145, %cst_27 [1, 2] : vector<1x16x16xf32> to vector<1xf32>
    %147 = vector.shape_cast %146 : vector<1xf32> to vector<1x1x1xf32>
    %148 = vector.extract %147[0, 0, 0] : f32 from vector<1x1x1xf32>
    %149 = vector.broadcast %148 : f32 to vector<1x1xf32>
    %cst_28 = arith.constant 3.906250e-03 : f32
    %150 = vector.broadcast %cst_28 : f32 to vector<1x1xf32>
    %151 = arith.mulf %149, %150 : vector<1x1xf32>
    %152 = arith.mulf %143, %143 : vector<1x1xf32>
    %153 = arith.subf %151, %152 : vector<1x1xf32>
    %154 = vector.broadcast %143 : vector<1x1xf32> to vector<16x16xf32>
    %155 = arith.subf %136, %154 : vector<16x16xf32>
    %cst_29 = arith.constant 9.99999974E-6 : f32
    %156 = vector.broadcast %cst_29 : f32 to vector<1x1xf32>
    %157 = arith.addf %153, %156 : vector<1x1xf32>
    %158 = math.rsqrt %157 : vector<1x1xf32>
    %159 = vector.broadcast %158 : vector<1x1xf32> to vector<16x16xf32>
    %160 = arith.mulf %155, %159 : vector<16x16xf32>
    %c2 = arith.constant 2 : index
    %c0_30 = arith.constant 0 : index
    %c0_31 = arith.constant 0 : index
    %161 = vector.load %arg7[%c2, %c0_30, %c0_31] : memref<4x18x18xf32, #tpu.memory_space<vmem>>, vector<1x18x18xf32>
    %162 = vector.shape_cast %161 : vector<1x18x18xf32> to vector<18x18xf32>
    %163 = vector.extract_strided_slice %162 {offsets = [0, 0], sizes = [16, 18], strides = [1, 1]} : vector<18x18xf32> to vector<16x18xf32>
    %164 = vector.extract_strided_slice %162 {offsets = [1, 0], sizes = [16, 18], strides = [1, 1]} : vector<18x18xf32> to vector<16x18xf32>
    %165 = vector.extract_strided_slice %162 {offsets = [2, 0], sizes = [16, 18], strides = [1, 1]} : vector<18x18xf32> to vector<16x18xf32>
    %cst_32 = arith.constant 0.000000e+00 : f32
    %166 = vector.broadcast %cst_32 : f32 to vector<16x16xf32>
    %167 = vector.extract_strided_slice %163 {offsets = [0, 0], sizes = [16, 16], strides = [1, 1]} : vector<16x18xf32> to vector<16x16xf32>
    %c2_33 = arith.constant 2 : index
    %168 = memref.load %arg2[%c2_33] : memref<36xf32, #tpu.memory_space<smem>>
    %169 = vector.broadcast %168 : f32 to vector<16x16xf32>
    %170 = arith.mulf %167, %169 : vector<16x16xf32>
    %171 = arith.addf %166, %170 : vector<16x16xf32>
    %172 = vector.extract_strided_slice %163 {offsets = [0, 1], sizes = [16, 16], strides = [1, 1]} : vector<16x18xf32> to vector<16x16xf32>
    %c6 = arith.constant 6 : index
    %173 = memref.load %arg2[%c6] : memref<36xf32, #tpu.memory_space<smem>>
    %174 = vector.broadcast %173 : f32 to vector<16x16xf32>
    %175 = arith.mulf %172, %174 : vector<16x16xf32>
    %176 = arith.addf %171, %175 : vector<16x16xf32>
    %177 = vector.extract_strided_slice %163 {offsets = [0, 2], sizes = [16, 16], strides = [1, 1]} : vector<16x18xf32> to vector<16x16xf32>
    %c10 = arith.constant 10 : index
    %178 = memref.load %arg2[%c10] : memref<36xf32, #tpu.memory_space<smem>>
    %179 = vector.broadcast %178 : f32 to vector<16x16xf32>
    %180 = arith.mulf %177, %179 : vector<16x16xf32>
    %181 = arith.addf %176, %180 : vector<16x16xf32>
    %182 = vector.extract_strided_slice %164 {offsets = [0, 0], sizes = [16, 16], strides = [1, 1]} : vector<16x18xf32> to vector<16x16xf32>
    %c14 = arith.constant 14 : index
    %183 = memref.load %arg2[%c14] : memref<36xf32, #tpu.memory_space<smem>>
    %184 = vector.broadcast %183 : f32 to vector<16x16xf32>
    %185 = arith.mulf %182, %184 : vector<16x16xf32>
    %186 = arith.addf %181, %185 : vector<16x16xf32>
    %187 = vector.extract_strided_slice %164 {offsets = [0, 1], sizes = [16, 16], strides = [1, 1]} : vector<16x18xf32> to vector<16x16xf32>
    %c18 = arith.constant 18 : index
    %188 = memref.load %arg2[%c18] : memref<36xf32, #tpu.memory_space<smem>>
    %189 = vector.broadcast %188 : f32 to vector<16x16xf32>
    %190 = arith.mulf %187, %189 : vector<16x16xf32>
    %191 = arith.addf %186, %190 : vector<16x16xf32>
    %192 = vector.extract_strided_slice %164 {offsets = [0, 2], sizes = [16, 16], strides = [1, 1]} : vector<16x18xf32> to vector<16x16xf32>
    %c22 = arith.constant 22 : index
    %193 = memref.load %arg2[%c22] : memref<36xf32, #tpu.memory_space<smem>>
    %194 = vector.broadcast %193 : f32 to vector<16x16xf32>
    %195 = arith.mulf %192, %194 : vector<16x16xf32>
    %196 = arith.addf %191, %195 : vector<16x16xf32>
    %197 = vector.extract_strided_slice %165 {offsets = [0, 0], sizes = [16, 16], strides = [1, 1]} : vector<16x18xf32> to vector<16x16xf32>
    %c26 = arith.constant 26 : index
    %198 = memref.load %arg2[%c26] : memref<36xf32, #tpu.memory_space<smem>>
    %199 = vector.broadcast %198 : f32 to vector<16x16xf32>
    %200 = arith.mulf %197, %199 : vector<16x16xf32>
    %201 = arith.addf %196, %200 : vector<16x16xf32>
    %202 = vector.extract_strided_slice %165 {offsets = [0, 1], sizes = [16, 16], strides = [1, 1]} : vector<16x18xf32> to vector<16x16xf32>
    %c30 = arith.constant 30 : index
    %203 = memref.load %arg2[%c30] : memref<36xf32, #tpu.memory_space<smem>>
    %204 = vector.broadcast %203 : f32 to vector<16x16xf32>
    %205 = arith.mulf %202, %204 : vector<16x16xf32>
    %206 = arith.addf %201, %205 : vector<16x16xf32>
    %207 = vector.extract_strided_slice %165 {offsets = [0, 2], sizes = [16, 16], strides = [1, 1]} : vector<16x18xf32> to vector<16x16xf32>
    %c34 = arith.constant 34 : index
    %208 = memref.load %arg2[%c34] : memref<36xf32, #tpu.memory_space<smem>>
    %209 = vector.broadcast %208 : f32 to vector<16x16xf32>
    %210 = arith.mulf %207, %209 : vector<16x16xf32>
    %211 = arith.addf %206, %210 : vector<16x16xf32>
    %c2_34 = arith.constant 2 : index
    %212 = memref.load %arg3[%c2_34] : memref<4xf32, #tpu.memory_space<smem>>
    %213 = vector.broadcast %212 : f32 to vector<16x16xf32>
    %214 = arith.addf %211, %213 : vector<16x16xf32>
    %215 = vector.shape_cast %214 : vector<16x16xf32> to vector<1x16x16xf32>
    %cst_35 = arith.constant dense<0.000000e+00> : vector<1xf32>
    %216 = vector.multi_reduction <add>, %215, %cst_35 [1, 2] : vector<1x16x16xf32> to vector<1xf32>
    %217 = vector.shape_cast %216 : vector<1xf32> to vector<1x1x1xf32>
    %218 = vector.extract %217[0, 0, 0] : f32 from vector<1x1x1xf32>
    %219 = vector.broadcast %218 : f32 to vector<1x1xf32>
    %cst_36 = arith.constant 3.906250e-03 : f32
    %220 = vector.broadcast %cst_36 : f32 to vector<1x1xf32>
    %221 = arith.mulf %219, %220 : vector<1x1xf32>
    %222 = arith.mulf %214, %214 : vector<16x16xf32>
    %223 = vector.shape_cast %222 : vector<16x16xf32> to vector<1x16x16xf32>
    %cst_37 = arith.constant dense<0.000000e+00> : vector<1xf32>
    %224 = vector.multi_reduction <add>, %223, %cst_37 [1, 2] : vector<1x16x16xf32> to vector<1xf32>
    %225 = vector.shape_cast %224 : vector<1xf32> to vector<1x1x1xf32>
    %226 = vector.extract %225[0, 0, 0] : f32 from vector<1x1x1xf32>
    %227 = vector.broadcast %226 : f32 to vector<1x1xf32>
    %cst_38 = arith.constant 3.906250e-03 : f32
    %228 = vector.broadcast %cst_38 : f32 to vector<1x1xf32>
    %229 = arith.mulf %227, %228 : vector<1x1xf32>
    %230 = arith.mulf %221, %221 : vector<1x1xf32>
    %231 = arith.subf %229, %230 : vector<1x1xf32>
    %232 = vector.broadcast %221 : vector<1x1xf32> to vector<16x16xf32>
    %233 = arith.subf %214, %232 : vector<16x16xf32>
    %cst_39 = arith.constant 9.99999974E-6 : f32
    %234 = vector.broadcast %cst_39 : f32 to vector<1x1xf32>
    %235 = arith.addf %231, %234 : vector<1x1xf32>
    %236 = math.rsqrt %235 : vector<1x1xf32>
    %237 = vector.broadcast %236 : vector<1x1xf32> to vector<16x16xf32>
    %238 = arith.mulf %233, %237 : vector<16x16xf32>
    %c3 = arith.constant 3 : index
    %c0_40 = arith.constant 0 : index
    %c0_41 = arith.constant 0 : index
    %239 = vector.load %arg7[%c3, %c0_40, %c0_41] : memref<4x18x18xf32, #tpu.memory_space<vmem>>, vector<1x18x18xf32>
    %240 = vector.shape_cast %239 : vector<1x18x18xf32> to vector<18x18xf32>
    %241 = vector.extract_strided_slice %240 {offsets = [0, 0], sizes = [16, 18], strides = [1, 1]} : vector<18x18xf32> to vector<16x18xf32>
    %242 = vector.extract_strided_slice %240 {offsets = [1, 0], sizes = [16, 18], strides = [1, 1]} : vector<18x18xf32> to vector<16x18xf32>
    %243 = vector.extract_strided_slice %240 {offsets = [2, 0], sizes = [16, 18], strides = [1, 1]} : vector<18x18xf32> to vector<16x18xf32>
    %cst_42 = arith.constant 0.000000e+00 : f32
    %244 = vector.broadcast %cst_42 : f32 to vector<16x16xf32>
    %245 = vector.extract_strided_slice %241 {offsets = [0, 0], sizes = [16, 16], strides = [1, 1]} : vector<16x18xf32> to vector<16x16xf32>
    %c3_43 = arith.constant 3 : index
    %246 = memref.load %arg2[%c3_43] : memref<36xf32, #tpu.memory_space<smem>>
    %247 = vector.broadcast %246 : f32 to vector<16x16xf32>
    %248 = arith.mulf %245, %247 : vector<16x16xf32>
    %249 = arith.addf %244, %248 : vector<16x16xf32>
    %250 = vector.extract_strided_slice %241 {offsets = [0, 1], sizes = [16, 16], strides = [1, 1]} : vector<16x18xf32> to vector<16x16xf32>
    %c7 = arith.constant 7 : index
    %251 = memref.load %arg2[%c7] : memref<36xf32, #tpu.memory_space<smem>>
    %252 = vector.broadcast %251 : f32 to vector<16x16xf32>
    %253 = arith.mulf %250, %252 : vector<16x16xf32>
    %254 = arith.addf %249, %253 : vector<16x16xf32>
    %255 = vector.extract_strided_slice %241 {offsets = [0, 2], sizes = [16, 16], strides = [1, 1]} : vector<16x18xf32> to vector<16x16xf32>
    %c11 = arith.constant 11 : index
    %256 = memref.load %arg2[%c11] : memref<36xf32, #tpu.memory_space<smem>>
    %257 = vector.broadcast %256 : f32 to vector<16x16xf32>
    %258 = arith.mulf %255, %257 : vector<16x16xf32>
    %259 = arith.addf %254, %258 : vector<16x16xf32>
    %260 = vector.extract_strided_slice %242 {offsets = [0, 0], sizes = [16, 16], strides = [1, 1]} : vector<16x18xf32> to vector<16x16xf32>
    %c15 = arith.constant 15 : index
    %261 = memref.load %arg2[%c15] : memref<36xf32, #tpu.memory_space<smem>>
    %262 = vector.broadcast %261 : f32 to vector<16x16xf32>
    %263 = arith.mulf %260, %262 : vector<16x16xf32>
    %264 = arith.addf %259, %263 : vector<16x16xf32>
    %265 = vector.extract_strided_slice %242 {offsets = [0, 1], sizes = [16, 16], strides = [1, 1]} : vector<16x18xf32> to vector<16x16xf32>
    %c19 = arith.constant 19 : index
    %266 = memref.load %arg2[%c19] : memref<36xf32, #tpu.memory_space<smem>>
    %267 = vector.broadcast %266 : f32 to vector<16x16xf32>
    %268 = arith.mulf %265, %267 : vector<16x16xf32>
    %269 = arith.addf %264, %268 : vector<16x16xf32>
    %270 = vector.extract_strided_slice %242 {offsets = [0, 2], sizes = [16, 16], strides = [1, 1]} : vector<16x18xf32> to vector<16x16xf32>
    %c23 = arith.constant 23 : index
    %271 = memref.load %arg2[%c23] : memref<36xf32, #tpu.memory_space<smem>>
    %272 = vector.broadcast %271 : f32 to vector<16x16xf32>
    %273 = arith.mulf %270, %272 : vector<16x16xf32>
    %274 = arith.addf %269, %273 : vector<16x16xf32>
    %275 = vector.extract_strided_slice %243 {offsets = [0, 0], sizes = [16, 16], strides = [1, 1]} : vector<16x18xf32> to vector<16x16xf32>
    %c27 = arith.constant 27 : index
    %276 = memref.load %arg2[%c27] : memref<36xf32, #tpu.memory_space<smem>>
    %277 = vector.broadcast %276 : f32 to vector<16x16xf32>
    %278 = arith.mulf %275, %277 : vector<16x16xf32>
    %279 = arith.addf %274, %278 : vector<16x16xf32>
    %280 = vector.extract_strided_slice %243 {offsets = [0, 1], sizes = [16, 16], strides = [1, 1]} : vector<16x18xf32> to vector<16x16xf32>
    %c31 = arith.constant 31 : index
    %281 = memref.load %arg2[%c31] : memref<36xf32, #tpu.memory_space<smem>>
    %282 = vector.broadcast %281 : f32 to vector<16x16xf32>
    %283 = arith.mulf %280, %282 : vector<16x16xf32>
    %284 = arith.addf %279, %283 : vector<16x16xf32>
    %285 = vector.extract_strided_slice %243 {offsets = [0, 2], sizes = [16, 16], strides = [1, 1]} : vector<16x18xf32> to vector<16x16xf32>
    %c35 = arith.constant 35 : index
    %286 = memref.load %arg2[%c35] : memref<36xf32, #tpu.memory_space<smem>>
    %287 = vector.broadcast %286 : f32 to vector<16x16xf32>
    %288 = arith.mulf %285, %287 : vector<16x16xf32>
    %289 = arith.addf %284, %288 : vector<16x16xf32>
    %c3_44 = arith.constant 3 : index
    %290 = memref.load %arg3[%c3_44] : memref<4xf32, #tpu.memory_space<smem>>
    %291 = vector.broadcast %290 : f32 to vector<16x16xf32>
    %292 = arith.addf %289, %291 : vector<16x16xf32>
    %293 = vector.shape_cast %292 : vector<16x16xf32> to vector<1x16x16xf32>
    %cst_45 = arith.constant dense<0.000000e+00> : vector<1xf32>
    %294 = vector.multi_reduction <add>, %293, %cst_45 [1, 2] : vector<1x16x16xf32> to vector<1xf32>
    %295 = vector.shape_cast %294 : vector<1xf32> to vector<1x1x1xf32>
    %296 = vector.extract %295[0, 0, 0] : f32 from vector<1x1x1xf32>
    %297 = vector.broadcast %296 : f32 to vector<1x1xf32>
    %cst_46 = arith.constant 3.906250e-03 : f32
    %298 = vector.broadcast %cst_46 : f32 to vector<1x1xf32>
    %299 = arith.mulf %297, %298 : vector<1x1xf32>
    %300 = arith.mulf %292, %292 : vector<16x16xf32>
    %301 = vector.shape_cast %300 : vector<16x16xf32> to vector<1x16x16xf32>
    %cst_47 = arith.constant dense<0.000000e+00> : vector<1xf32>
    %302 = vector.multi_reduction <add>, %301, %cst_47 [1, 2] : vector<1x16x16xf32> to vector<1xf32>
    %303 = vector.shape_cast %302 : vector<1xf32> to vector<1x1x1xf32>
    %304 = vector.extract %303[0, 0, 0] : f32 from vector<1x1x1xf32>
    %305 = vector.broadcast %304 : f32 to vector<1x1xf32>
    %cst_48 = arith.constant 3.906250e-03 : f32
    %306 = vector.broadcast %cst_48 : f32 to vector<1x1xf32>
    %307 = arith.mulf %305, %306 : vector<1x1xf32>
    %308 = arith.mulf %299, %299 : vector<1x1xf32>
    %309 = arith.subf %307, %308 : vector<1x1xf32>
    %310 = vector.broadcast %299 : vector<1x1xf32> to vector<16x16xf32>
    %311 = arith.subf %292, %310 : vector<16x16xf32>
    %cst_49 = arith.constant 9.99999974E-6 : f32
    %312 = vector.broadcast %cst_49 : f32 to vector<1x1xf32>
    %313 = arith.addf %309, %312 : vector<1x1xf32>
    %314 = math.rsqrt %313 : vector<1x1xf32>
    %315 = vector.broadcast %314 : vector<1x1xf32> to vector<16x16xf32>
    %316 = arith.mulf %311, %315 : vector<16x16xf32>
    %cst_50 = arith.constant 0.000000e+00 : f32
    %317 = vector.broadcast %cst_50 : f32 to vector<16x16xf32>
    %c0_51 = arith.constant 0 : index
    %318 = memref.load %arg4[%c0_51] : memref<32xf32, #tpu.memory_space<smem>>
    %319 = vector.broadcast %318 : f32 to vector<16x16xf32>
    %320 = arith.mulf %82, %319 : vector<16x16xf32>
    %321 = arith.addf %317, %320 : vector<16x16xf32>
    %c1_52 = arith.constant 1 : index
    %322 = memref.load %arg4[%c1_52] : memref<32xf32, #tpu.memory_space<smem>>
    %323 = vector.broadcast %322 : f32 to vector<16x16xf32>
    %324 = arith.mulf %160, %323 : vector<16x16xf32>
    %325 = arith.addf %321, %324 : vector<16x16xf32>
    %c2_53 = arith.constant 2 : index
    %326 = memref.load %arg4[%c2_53] : memref<32xf32, #tpu.memory_space<smem>>
    %327 = vector.broadcast %326 : f32 to vector<16x16xf32>
    %328 = arith.mulf %238, %327 : vector<16x16xf32>
    %329 = arith.addf %325, %328 : vector<16x16xf32>
    %c3_54 = arith.constant 3 : index
    %330 = memref.load %arg4[%c3_54] : memref<32xf32, #tpu.memory_space<smem>>
    %331 = vector.broadcast %330 : f32 to vector<16x16xf32>
    %332 = arith.mulf %316, %331 : vector<16x16xf32>
    %333 = arith.addf %329, %332 : vector<16x16xf32>
    %c0_55 = arith.constant 0 : index
    %334 = memref.load %arg5[%c0_55] : memref<8xf32, #tpu.memory_space<smem>>
    %335 = vector.broadcast %334 : f32 to vector<16x16xf32>
    %336 = arith.addf %333, %335 : vector<16x16xf32>
    %c0_56 = arith.constant 0 : index
    %c0_57 = arith.constant 0 : index
    %c0_58 = arith.constant 0 : index
    %c0_59 = arith.constant 0 : index
    %337 = vector.load %arg6[%c0_56, %c0_57, %c0_58, %c0_59] : memref<1x8x16x16xf32, #tpu.memory_space<vmem>>, vector<1x1x16x16xf32>
    %338 = vector.shape_cast %337 : vector<1x1x16x16xf32> to vector<16x16xf32>
    %339 = vector.shape_cast %336 : vector<16x16xf32> to vector<1x1x16x16xf32>
    tpu.vector_store %arg6[%c0_56, %c0_57, %c0_58, %c0_59], %339 {strides = array<i32>} : memref<1x8x16x16xf32, #tpu.memory_space<vmem>>, vector<1x1x16x16xf32>,
    %cst_60 = arith.constant 0.000000e+00 : f32
    %340 = vector.broadcast %cst_60 : f32 to vector<16x16xf32>
    %c4_61 = arith.constant 4 : index
    %341 = memref.load %arg4[%c4_61] : memref<32xf32, #tpu.memory_space<smem>>
    %342 = vector.broadcast %341 : f32 to vector<16x16xf32>
    %343 = arith.mulf %82, %342 : vector<16x16xf32>
    %344 = arith.addf %340, %343 : vector<16x16xf32>
    %c5_62 = arith.constant 5 : index
    %345 = memref.load %arg4[%c5_62] : memref<32xf32, #tpu.memory_space<smem>>
    %346 = vector.broadcast %345 : f32 to vector<16x16xf32>
    %347 = arith.mulf %160, %346 : vector<16x16xf32>
    %348 = arith.addf %344, %347 : vector<16x16xf32>
    %c6_63 = arith.constant 6 : index
    %349 = memref.load %arg4[%c6_63] : memref<32xf32, #tpu.memory_space<smem>>
    %350 = vector.broadcast %349 : f32 to vector<16x16xf32>
    %351 = arith.mulf %238, %350 : vector<16x16xf32>
    %352 = arith.addf %348, %351 : vector<16x16xf32>
    %c7_64 = arith.constant 7 : index
    %353 = memref.load %arg4[%c7_64] : memref<32xf32, #tpu.memory_space<smem>>
    %354 = vector.broadcast %353 : f32 to vector<16x16xf32>
    %355 = arith.mulf %316, %354 : vector<16x16xf32>
    %356 = arith.addf %352, %355 : vector<16x16xf32>
    %c1_65 = arith.constant 1 : index
    %357 = memref.load %arg5[%c1_65] : memref<8xf32, #tpu.memory_space<smem>>
    %358 = vector.broadcast %357 : f32 to vector<16x16xf32>
    %359 = arith.addf %356, %358 : vector<16x16xf32>
    %c0_66 = arith.constant 0 : index
    %c1_67 = arith.constant 1 : index
    %c0_68 = arith.constant 0 : index
    %c0_69 = arith.constant 0 : index
    %360 = vector.load %arg6[%c0_66, %c1_67, %c0_68, %c0_69] : memref<1x8x16x16xf32, #tpu.memory_space<vmem>>, vector<1x1x16x16xf32>
    %361 = vector.shape_cast %360 : vector<1x1x16x16xf32> to vector<16x16xf32>
    %362 = vector.shape_cast %359 : vector<16x16xf32> to vector<1x1x16x16xf32>
    tpu.vector_store %arg6[%c0_66, %c1_67, %c0_68, %c0_69], %362 {strides = array<i32>} : memref<1x8x16x16xf32, #tpu.memory_space<vmem>>, vector<1x1x16x16xf32>,
    %cst_70 = arith.constant 0.000000e+00 : f32
    %363 = vector.broadcast %cst_70 : f32 to vector<16x16xf32>
    %c8_71 = arith.constant 8 : index
    %364 = memref.load %arg4[%c8_71] : memref<32xf32, #tpu.memory_space<smem>>
    %365 = vector.broadcast %364 : f32 to vector<16x16xf32>
    %366 = arith.mulf %82, %365 : vector<16x16xf32>
    %367 = arith.addf %363, %366 : vector<16x16xf32>
    %c9_72 = arith.constant 9 : index
    %368 = memref.load %arg4[%c9_72] : memref<32xf32, #tpu.memory_space<smem>>
    %369 = vector.broadcast %368 : f32 to vector<16x16xf32>
    %370 = arith.mulf %160, %369 : vector<16x16xf32>
    %371 = arith.addf %367, %370 : vector<16x16xf32>
    %c10_73 = arith.constant 10 : index
    %372 = memref.load %arg4[%c10_73] : memref<32xf32, #tpu.memory_space<smem>>
    %373 = vector.broadcast %372 : f32 to vector<16x16xf32>
    %374 = arith.mulf %238, %373 : vector<16x16xf32>
    %375 = arith.addf %371, %374 : vector<16x16xf32>
    %c11_74 = arith.constant 11 : index
    %376 = memref.load %arg4[%c11_74] : memref<32xf32, #tpu.memory_space<smem>>
    %377 = vector.broadcast %376 : f32 to vector<16x16xf32>
    %378 = arith.mulf %316, %377 : vector<16x16xf32>
    %379 = arith.addf %375, %378 : vector<16x16xf32>
    %c2_75 = arith.constant 2 : index
    %380 = memref.load %arg5[%c2_75] : memref<8xf32, #tpu.memory_space<smem>>
    %381 = vector.broadcast %380 : f32 to vector<16x16xf32>
    %382 = arith.addf %379, %381 : vector<16x16xf32>
    %c0_76 = arith.constant 0 : index
    %c2_77 = arith.constant 2 : index
    %c0_78 = arith.constant 0 : index
    %c0_79 = arith.constant 0 : index
    %383 = vector.load %arg6[%c0_76, %c2_77, %c0_78, %c0_79] : memref<1x8x16x16xf32, #tpu.memory_space<vmem>>, vector<1x1x16x16xf32>
    %384 = vector.shape_cast %383 : vector<1x1x16x16xf32> to vector<16x16xf32>
    %385 = vector.shape_cast %382 : vector<16x16xf32> to vector<1x1x16x16xf32>
    tpu.vector_store %arg6[%c0_76, %c2_77, %c0_78, %c0_79], %385 {strides = array<i32>} : memref<1x8x16x16xf32, #tpu.memory_space<vmem>>, vector<1x1x16x16xf32>,
    %cst_80 = arith.constant 0.000000e+00 : f32
    %386 = vector.broadcast %cst_80 : f32 to vector<16x16xf32>
    %c12_81 = arith.constant 12 : index
    %387 = memref.load %arg4[%c12_81] : memref<32xf32, #tpu.memory_space<smem>>
    %388 = vector.broadcast %387 : f32 to vector<16x16xf32>
    %389 = arith.mulf %82, %388 : vector<16x16xf32>
    %390 = arith.addf %386, %389 : vector<16x16xf32>
    %c13_82 = arith.constant 13 : index
    %391 = memref.load %arg4[%c13_82] : memref<32xf32, #tpu.memory_space<smem>>
    %392 = vector.broadcast %391 : f32 to vector<16x16xf32>
    %393 = arith.mulf %160, %392 : vector<16x16xf32>
    %394 = arith.addf %390, %393 : vector<16x16xf32>
    %c14_83 = arith.constant 14 : index
    %395 = memref.load %arg4[%c14_83] : memref<32xf32, #tpu.memory_space<smem>>
    %396 = vector.broadcast %395 : f32 to vector<16x16xf32>
    %397 = arith.mulf %238, %396 : vector<16x16xf32>
    %398 = arith.addf %394, %397 : vector<16x16xf32>
    %c15_84 = arith.constant 15 : index
    %399 = memref.load %arg4[%c15_84] : memref<32xf32, #tpu.memory_space<smem>>
    %400 = vector.broadcast %399 : f32 to vector<16x16xf32>
    %401 = arith.mulf %316, %400 : vector<16x16xf32>
    %402 = arith.addf %398, %401 : vector<16x16xf32>
    %c3_85 = arith.constant 3 : index
    %403 = memref.load %arg5[%c3_85] : memref<8xf32, #tpu.memory_space<smem>>
    %404 = vector.broadcast %403 : f32 to vector<16x16xf32>
    %405 = arith.addf %402, %404 : vector<16x16xf32>
    %c0_86 = arith.constant 0 : index
    %c3_87 = arith.constant 3 : index
    %c0_88 = arith.constant 0 : index
    %c0_89 = arith.constant 0 : index
    %406 = vector.load %arg6[%c0_86, %c3_87, %c0_88, %c0_89] : memref<1x8x16x16xf32, #tpu.memory_space<vmem>>, vector<1x1x16x16xf32>
    %407 = vector.shape_cast %406 : vector<1x1x16x16xf32> to vector<16x16xf32>
    %408 = vector.shape_cast %405 : vector<16x16xf32> to vector<1x1x16x16xf32>
    tpu.vector_store %arg6[%c0_86, %c3_87, %c0_88, %c0_89], %408 {strides = array<i32>} : memref<1x8x16x16xf32, #tpu.memory_space<vmem>>, vector<1x1x16x16xf32>,
    %cst_90 = arith.constant 0.000000e+00 : f32
    %409 = vector.broadcast %cst_90 : f32 to vector<16x16xf32>
    %c16_91 = arith.constant 16 : index
    %410 = memref.load %arg4[%c16_91] : memref<32xf32, #tpu.memory_space<smem>>
    %411 = vector.broadcast %410 : f32 to vector<16x16xf32>
    %412 = arith.mulf %82, %411 : vector<16x16xf32>
    %413 = arith.addf %409, %412 : vector<16x16xf32>
    %c17_92 = arith.constant 17 : index
    %414 = memref.load %arg4[%c17_92] : memref<32xf32, #tpu.memory_space<smem>>
    %415 = vector.broadcast %414 : f32 to vector<16x16xf32>
    %416 = arith.mulf %160, %415 : vector<16x16xf32>
    %417 = arith.addf %413, %416 : vector<16x16xf32>
    %c18_93 = arith.constant 18 : index
    %418 = memref.load %arg4[%c18_93] : memref<32xf32, #tpu.memory_space<smem>>
    %419 = vector.broadcast %418 : f32 to vector<16x16xf32>
    %420 = arith.mulf %238, %419 : vector<16x16xf32>
    %421 = arith.addf %417, %420 : vector<16x16xf32>
    %c19_94 = arith.constant 19 : index
    %422 = memref.load %arg4[%c19_94] : memref<32xf32, #tpu.memory_space<smem>>
    %423 = vector.broadcast %422 : f32 to vector<16x16xf32>
    %424 = arith.mulf %316, %423 : vector<16x16xf32>
    %425 = arith.addf %421, %424 : vector<16x16xf32>
    %c4_95 = arith.constant 4 : index
    %426 = memref.load %arg5[%c4_95] : memref<8xf32, #tpu.memory_space<smem>>
    %427 = vector.broadcast %426 : f32 to vector<16x16xf32>
    %428 = arith.addf %425, %427 : vector<16x16xf32>
    %c0_96 = arith.constant 0 : index
    %c4_97 = arith.constant 4 : index
    %c0_98 = arith.constant 0 : index
    %c0_99 = arith.constant 0 : index
    %429 = vector.load %arg6[%c0_96, %c4_97, %c0_98, %c0_99] : memref<1x8x16x16xf32, #tpu.memory_space<vmem>>, vector<1x1x16x16xf32>
    %430 = vector.shape_cast %429 : vector<1x1x16x16xf32> to vector<16x16xf32>
    %431 = vector.shape_cast %428 : vector<16x16xf32> to vector<1x1x16x16xf32>
    tpu.vector_store %arg6[%c0_96, %c4_97, %c0_98, %c0_99], %431 {strides = array<i32>} : memref<1x8x16x16xf32, #tpu.memory_space<vmem>>, vector<1x1x16x16xf32>,
    %cst_100 = arith.constant 0.000000e+00 : f32
    %432 = vector.broadcast %cst_100 : f32 to vector<16x16xf32>
    %c20_101 = arith.constant 20 : index
    %433 = memref.load %arg4[%c20_101] : memref<32xf32, #tpu.memory_space<smem>>
    %434 = vector.broadcast %433 : f32 to vector<16x16xf32>
    %435 = arith.mulf %82, %434 : vector<16x16xf32>
    %436 = arith.addf %432, %435 : vector<16x16xf32>
    %c21_102 = arith.constant 21 : index
    %437 = memref.load %arg4[%c21_102] : memref<32xf32, #tpu.memory_space<smem>>
    %438 = vector.broadcast %437 : f32 to vector<16x16xf32>
    %439 = arith.mulf %160, %438 : vector<16x16xf32>
    %440 = arith.addf %436, %439 : vector<16x16xf32>
    %c22_103 = arith.constant 22 : index
    %441 = memref.load %arg4[%c22_103] : memref<32xf32, #tpu.memory_space<smem>>
    %442 = vector.broadcast %441 : f32 to vector<16x16xf32>
    %443 = arith.mulf %238, %442 : vector<16x16xf32>
    %444 = arith.addf %440, %443 : vector<16x16xf32>
    %c23_104 = arith.constant 23 : index
    %445 = memref.load %arg4[%c23_104] : memref<32xf32, #tpu.memory_space<smem>>
    %446 = vector.broadcast %445 : f32 to vector<16x16xf32>
    %447 = arith.mulf %316, %446 : vector<16x16xf32>
    %448 = arith.addf %444, %447 : vector<16x16xf32>
    %c5_105 = arith.constant 5 : index
    %449 = memref.load %arg5[%c5_105] : memref<8xf32, #tpu.memory_space<smem>>
    %450 = vector.broadcast %449 : f32 to vector<16x16xf32>
    %451 = arith.addf %448, %450 : vector<16x16xf32>
    %c0_106 = arith.constant 0 : index
    %c5_107 = arith.constant 5 : index
    %c0_108 = arith.constant 0 : index
    %c0_109 = arith.constant 0 : index
    %452 = vector.load %arg6[%c0_106, %c5_107, %c0_108, %c0_109] : memref<1x8x16x16xf32, #tpu.memory_space<vmem>>, vector<1x1x16x16xf32>
    %453 = vector.shape_cast %452 : vector<1x1x16x16xf32> to vector<16x16xf32>
    %454 = vector.shape_cast %451 : vector<16x16xf32> to vector<1x1x16x16xf32>
    tpu.vector_store %arg6[%c0_106, %c5_107, %c0_108, %c0_109], %454 {strides = array<i32>} : memref<1x8x16x16xf32, #tpu.memory_space<vmem>>, vector<1x1x16x16xf32>,
    %cst_110 = arith.constant 0.000000e+00 : f32
    %455 = vector.broadcast %cst_110 : f32 to vector<16x16xf32>
    %c24_111 = arith.constant 24 : index
    %456 = memref.load %arg4[%c24_111] : memref<32xf32, #tpu.memory_space<smem>>
    %457 = vector.broadcast %456 : f32 to vector<16x16xf32>
    %458 = arith.mulf %82, %457 : vector<16x16xf32>
    %459 = arith.addf %455, %458 : vector<16x16xf32>
    %c25_112 = arith.constant 25 : index
    %460 = memref.load %arg4[%c25_112] : memref<32xf32, #tpu.memory_space<smem>>
    %461 = vector.broadcast %460 : f32 to vector<16x16xf32>
    %462 = arith.mulf %160, %461 : vector<16x16xf32>
    %463 = arith.addf %459, %462 : vector<16x16xf32>
    %c26_113 = arith.constant 26 : index
    %464 = memref.load %arg4[%c26_113] : memref<32xf32, #tpu.memory_space<smem>>
    %465 = vector.broadcast %464 : f32 to vector<16x16xf32>
    %466 = arith.mulf %238, %465 : vector<16x16xf32>
    %467 = arith.addf %463, %466 : vector<16x16xf32>
    %c27_114 = arith.constant 27 : index
    %468 = memref.load %arg4[%c27_114] : memref<32xf32, #tpu.memory_space<smem>>
    %469 = vector.broadcast %468 : f32 to vector<16x16xf32>
    %470 = arith.mulf %316, %469 : vector<16x16xf32>
    %471 = arith.addf %467, %470 : vector<16x16xf32>
    %c6_115 = arith.constant 6 : index
    %472 = memref.load %arg5[%c6_115] : memref<8xf32, #tpu.memory_space<smem>>
    %473 = vector.broadcast %472 : f32 to vector<16x16xf32>
    %474 = arith.addf %471, %473 : vector<16x16xf32>
    %c0_116 = arith.constant 0 : index
    %c6_117 = arith.constant 6 : index
    %c0_118 = arith.constant 0 : index
    %c0_119 = arith.constant 0 : index
    %475 = vector.load %arg6[%c0_116, %c6_117, %c0_118, %c0_119] : memref<1x8x16x16xf32, #tpu.memory_space<vmem>>, vector<1x1x16x16xf32>
    %476 = vector.shape_cast %475 : vector<1x1x16x16xf32> to vector<16x16xf32>
    %477 = vector.shape_cast %474 : vector<16x16xf32> to vector<1x1x16x16xf32>
    tpu.vector_store %arg6[%c0_116, %c6_117, %c0_118, %c0_119], %477 {strides = array<i32>} : memref<1x8x16x16xf32, #tpu.memory_space<vmem>>, vector<1x1x16x16xf32>,
    %cst_120 = arith.constant 0.000000e+00 : f32
    %478 = vector.broadcast %cst_120 : f32 to vector<16x16xf32>
    %c28_121 = arith.constant 28 : index
    %479 = memref.load %arg4[%c28_121] : memref<32xf32, #tpu.memory_space<smem>>
    %480 = vector.broadcast %479 : f32 to vector<16x16xf32>
    %481 = arith.mulf %82, %480 : vector<16x16xf32>
    %482 = arith.addf %478, %481 : vector<16x16xf32>
    %c29_122 = arith.constant 29 : index
    %483 = memref.load %arg4[%c29_122] : memref<32xf32, #tpu.memory_space<smem>>
    %484 = vector.broadcast %483 : f32 to vector<16x16xf32>
    %485 = arith.mulf %160, %484 : vector<16x16xf32>
    %486 = arith.addf %482, %485 : vector<16x16xf32>
    %c30_123 = arith.constant 30 : index
    %487 = memref.load %arg4[%c30_123] : memref<32xf32, #tpu.memory_space<smem>>
    %488 = vector.broadcast %487 : f32 to vector<16x16xf32>
    %489 = arith.mulf %238, %488 : vector<16x16xf32>
    %490 = arith.addf %486, %489 : vector<16x16xf32>
    %c31_124 = arith.constant 31 : index
    %491 = memref.load %arg4[%c31_124] : memref<32xf32, #tpu.memory_space<smem>>
    %492 = vector.broadcast %491 : f32 to vector<16x16xf32>
    %493 = arith.mulf %316, %492 : vector<16x16xf32>
    %494 = arith.addf %490, %493 : vector<16x16xf32>
    %c7_125 = arith.constant 7 : index
    %495 = memref.load %arg5[%c7_125] : memref<8xf32, #tpu.memory_space<smem>>
    %496 = vector.broadcast %495 : f32 to vector<16x16xf32>
    %497 = arith.addf %494, %496 : vector<16x16xf32>
    %c0_126 = arith.constant 0 : index
    %c7_127 = arith.constant 7 : index
    %c0_128 = arith.constant 0 : index
    %c0_129 = arith.constant 0 : index
    %498 = vector.load %arg6[%c0_126, %c7_127, %c0_128, %c0_129] : memref<1x8x16x16xf32, #tpu.memory_space<vmem>>, vector<1x1x16x16xf32>
    %499 = vector.shape_cast %498 : vector<1x1x16x16xf32> to vector<16x16xf32>
    %500 = vector.shape_cast %497 : vector<16x16xf32> to vector<1x1x16x16xf32>
    tpu.vector_store %arg6[%c0_126, %c7_127, %c0_128, %c0_129], %500 {strides = array<i32>} : memref<1x8x16x16xf32, #tpu.memory_space<vmem>>, vector<1x1x16x16xf32>,
    return
  }
  func.func @transform_0(%arg0: i32) -> (i32, i32, i32, i32) {
    %c0_i32 = arith.constant 0 : i32
    %c0_i32_0 = arith.constant 0 : i32
    %c0_i32_1 = arith.constant 0 : i32
    %c0_i32_2 = arith.constant 0 : i32
    return %arg0, %c0_i32, %c0_i32_0, %c0_i32_1 : i32, i32, i32, i32
  }
  func.func @transform_1(%arg0: i32) -> i32 {
    %c0_i32 = arith.constant 0 : i32
    %c0_i32_0 = arith.constant 0 : i32
    return %c0_i32 : i32
  }
  func.func @transform_2(%arg0: i32) -> i32 {
    %c0_i32 = arith.constant 0 : i32
    %c0_i32_0 = arith.constant 0 : i32
    return %c0_i32 : i32
  }
  func.func @transform_3(%arg0: i32) -> i32 {
    %c0_i32 = arith.constant 0 : i32
    %c0_i32_0 = arith.constant 0 : i32
    return %c0_i32 : i32
  }
  func.func @transform_4(%arg0: i32) -> i32 {
    %c0_i32 = arith.constant 0 : i32
    %c0_i32_0 = arith.constant 0 : i32
    return %c0_i32 : i32
  }
  func.func @transform_5(%arg0: i32) -> (i32, i32, i32, i32) {
    %c0_i32 = arith.constant 0 : i32
    %c0_i32_0 = arith.constant 0 : i32
    %c0_i32_1 = arith.constant 0 : i32
    %c0_i32_2 = arith.constant 0 : i32
    return %arg0, %c0_i32, %c0_i32_0, %c0_i32_1 : i32, i32, i32, i32
  }
}

</mosaic_0001>

<bundles_post_ra>
// kernel: tpu_custom_call.1
= control target key start
LH: loop header
LB: loop body
LE: loop exit
PB: predicated region body
PF: predicated region fallthrough
CT: control target
= control target key end

     0   :  { %s3059_s0 = inlined_call_operand.hbm [shape: f32[2,4,16,16], index: 0, kind: input, shape index: {}]   ;;  %s3060_s1 = inlined_call_operand.vmem [shape: f32[36], index: 1, kind: input, shape index: {}]   ;;  %s3061_s2 = inlined_call_operand.vmem [shape: f32[4], index: 2, kind: input, shape index: {}]   ;;  %s3062_s3 = inlined_call_operand.vmem [shape: f32[32], index: 3, kind: input, shape index: {}]   ;;  %s3063_s4 = inlined_call_operand.vmem [shape: f32[8], index: 4, kind: input, shape index: {}]   ;;  %s3064_s5 = inlined_call_operand.hbm [shape: f32[2,8,16,16], index: 5, kind: output, shape index: {}]  }
   0x1   :  { %3118 = sst [smem:[#allocation46_spill]] %s3059_s0 }
   0x2   :  { %3119 = sst [smem:[#allocation47_spill]] %s3060_s1 }
   0x3   :  { %3120 = sst [smem:[#allocation48_spill]] %s3061_s2 }
   0x4   :  { %3121 = sst [smem:[#allocation49_spill]] %s3062_s3 }
   0x5   :  { %3122 = sst [smem:[#allocation50_spill]] %s3063_s4 }
   0x6   :  { %3123 = sst [smem:[#allocation51_spill]] %s3064_s5 }
   0x7   :  { %10 = vsyncpa [#allocation4], 0 }
   0x8   :  { %12 = vsyncpa [#allocation4 + $0x1], 0 }
   0x9   :  { %13 = vsyncpa [#allocation6], 0 }
   0xa   :  { %14 = vsyncpa [#allocation9], 0 }
   0xb   :  { %15 = vsyncpa [#allocation12], 0 }
   0xc   :  { %16 = vsyncpa [#allocation5], 0 }
   0xd   :  { %18 = vsyncpa [#allocation5 + $0x1], 0  ;;  %s1974_s18 = smov 0   ;;  %s1976_s19 = smov 0  }
   0xe   :  { %s1978_s20 = smov 0   ;;  %s1980_s21 = smov 0  }
   0xf LB: > { %3124 = sst [smem:[#allocation19_spill]] %s1916_s18  ;;  %s1995_s22 = sadd.s32 4294967295, %s1928_s21   ;;  %s1928_s21 = sphi %s1980_s21, %s3223_s21   ;;  %s1924_s20 = sphi %s1978_s20, %s3226_s20   ;;  %s1920_s19 = sphi %s1976_s19, %s3225_s19   ;;  %s1916_s18 = sphi %s1974_s18, %s3224_s18  }
  0x10   : > { %3125 = sst [smem:[#allocation20_spill]] %s1920_s19  ;;  %s1527_s23 = sadd.s32 4294967294, %s1928_s21  }
  0x11   : > { %3126 = sst [smem:[#allocation21_spill]] %s1924_s20  ;;  %p44_p0 = scmp.ne.s32.totalorder %s1920_s19, %s1916_s18 }
  0x12   : > { %3127 = sst [smem:[#allocation22_spill]] %s1928_s21  ;;  %p3065_p1 = scmp.eq.s32.totalorder %s1995_s22, 0 }
  0x13   : > { %3128 = sst [smem:[#allocation23_spill]] %s1995_s22  ;;  %p158_p3 = scmp.eq.s32.totalorder %s1527_s23, 1 }
  0x14   : > { %p2004_p4 = por %p3065_p1, %p44_p0  ;;  %p1528_p5 = scmp.ge.s32.totalorder %s1928_s21, 1 }
  0x15   : > { %p2009_p6 = por %p158_p3, %p44_p0  ;;  %p165_p7 = scmp.lt.s32.totalorder %s1928_s21, 3 }
  0x16   : > { %s3129_s24 = scalar_select %p2004_p4, 1, 0 }
  0x17   : > { %s3130_s25 = scalar_select %p2009_p6, 1, 0 }
  0x18   : > { %s3132_s2 = sld [smem:[#allocation48_spill]]  ;;  %p2017_p8 = pnand %p1528_p5, %p165_p7 }
  0x19   : > { %3131 = sst [smem:[#allocation24_spill]] %s3130_s25  ;;  %s3134_s1 = sld [smem:[#allocation47_spill]] }
  0x1a   : > { %s3133_s29 = scalar_select %p2017_p8, 1, 0 }
  0x1b   : > { %p1677_p10 = pneg %p2017_p8  ;;  %s3136_s3 = sld [smem:[#allocation49_spill]] }
  0x1c   : > { %s3137_s4 = sld [smem:[#allocation50_spill]] }
  0x1d   : > { %p2029_p11 = pnand %p1677_p10, %p3065_p1 }
  0x1e   : > { %s189_s28 = sshll.u32 %s3132_s2, 4  ;;  %s190_s28 = int_to_ptr.vmem [resolvable:$true] %s189_s28 }
  0x1f   : > { %s178_s7 = sshll.u32 %s3134_s1, 4  ;;  %s1760_s15 = scalar_lea.vmem %s190_s28, 16  ;;  %s179_s7 = int_to_ptr.vmem [resolvable:$true] %s178_s7 }
  0x20   : > { %p1761_p12 = scmp.ne.s32.totalorder %s190_s28, %s1760_s15  ;;  %p1762_p13 = pneg %p2029_p11 }
  0x21   : > { %s200_s11 = sshll.u32 %s3136_s3, 4  ;;  %p1768_p5 = scmp.lt.s32.totalorder %s190_s28, %s190_s28  ;;  %s2036_s11 = int_to_ptr.vmem [resolvable:$true] %s200_s11 }
  0x22   : > { %s211_s14 = sshll.u32 %s3137_s4, 4  ;;  %p1763_p0 = pnand %p1762_p13, %p1761_p12  ;;  %s212_s14 = int_to_ptr.vmem [resolvable:$true] %s211_s14 }
  0x23   : > { %p1769_p7 = scmp.lt.s32.totalorder %s1760_s15, %s1760_s15 }
  0x24   : > { %p1764_p3 = pneg %p1763_p0 }
  0x25   : > { %p1770_p10 = por %p1769_p7, %p1768_p5 }
  0x27   : > { %p1771_p9 = pnand %p1770_p10, %p1764_p3 }
  0x29   : > { %1774 = shalt.err (!%p1771_p9)
}
  0x2a   : > { %s1930_s16 = smov [#allocation8]   ;;  %s1775_s17 = scalar_lea.vmem %s179_s7, 16 }
  0x2b   : > { %1683 = dma.vmem_to_smem (!%p2029_p11), %s190_s28, 16, %s1930_s16, [#allocation9]  }
  0x2c   : > { %p1776_p1 = scmp.ne.s32.totalorder %s179_s7, %s1775_s17  ;;  %p1783_p4 = scmp.lt.s32.totalorder %s179_s7, %s179_s7 }
  0x2d   : > { %p1784_p8 = scmp.lt.s32.totalorder %s1775_s17, %s1775_s17 }
  0x2e   : > { %p1778_p2 = pnand %p1776_p1, %p1762_p13 }
  0x2f   : > { %p1785_p12 = por %p1784_p8, %p1783_p4 }
  0x30   : > { %p1779_p6 = pneg %p1778_p2 }
  0x32   : > { %p1786_p0 = pnand %p1785_p12, %p1779_p6 }
  0x34   : > { %1789 = shalt.err (!%p1786_p0)
}
  0x35   : > { %s1931_s23 = smov [#allocation7]   ;;  %s1790_s26 = scalar_lea.vmem %s2036_s11, 16 }
  0x36   : > { %1680 = dma.vmem_to_smem (!%p2029_p11), %s179_s7, 16, %s1931_s23, [#allocation6]  }
  0x37   : > { %p1791_p9 = scmp.ne.s32.totalorder %s2036_s11, %s1790_s26  ;;  %p1798_p2 = scmp.lt.s32.totalorder %s2036_s11, %s2036_s11 }
  0x38   : > { %p1799_p5 = scmp.lt.s32.totalorder %s1790_s26, %s1790_s26 }
  0x39   : > { %p1793_p3 = pnand %p1791_p9, %p1762_p13 }
  0x3a   : > { %p1800_p4 = por %p1799_p5, %p1798_p2 }
  0x3b   : > { %p1794_p1 = pneg %p1793_p3 }
  0x3d   : > { %p1801_p6 = pnand %p1800_p4, %p1794_p1 }
  0x3f   : > { %1804 = shalt.err (!%p1801_p6)
}
  0x40   : > { %s1932_s27 = smov [#allocation10]   ;;  %s1805_s6 = scalar_lea.vmem %s212_s14, 16 }
  0x41   : > { %1686 = dma.vmem_to_smem (!%p2029_p11), %s2036_s11, 16, %s1932_s27, [#allocation9]  }
  0x42   : > { %p1806_p8 = scmp.ne.s32.totalorder %s212_s14, %s1805_s6  ;;  %p1813_p12 = scmp.lt.s32.totalorder %s212_s14, %s212_s14 }
  0x43   : > { %p1814_p0 = scmp.lt.s32.totalorder %s1805_s6, %s1805_s6 }
  0x44   : > { %p1808_p7 = pnand %p1806_p8, %p1762_p13 }
  0x45   : > { %p1815_p9 = por %p1814_p0, %p1813_p12 }
  0x46   : > { %p1809_p10 = pneg %p1808_p7 }
  0x48   : > { %p1816_p3 = pnand %p1815_p9, %p1809_p10 }
  0x4a   : > { %1819 = shalt.err (!%p1816_p3)
}
  0x4b   : > { %s1933_s7 = smov [#allocation11]   ;;  %s2073_s9 = sadd.s32 1, %s1928_s21  }
  0x4c   : > { %1689 = dma.vmem_to_smem (!%p2029_p11), %s212_s14, 16, %s1933_s7, [#allocation12]  }
  0x4d   : > { %3138 = sst [smem:[#allocation25_spill]] %s2073_s9  ;;  %s28_s10 = ssub.s32 %s1928_s21, %s2073_s9 }
  0x4e   : > { %p29_p13 = scmp.eq.s32.totalorder %s28_s10, 0  ;;  %s31_s11 = sadd.s32 1, %s1924_s20 }
  0x4f   : > { %p38_p1 = scmp.ne.s32.totalorder %s1924_s20, %s1920_s19  ;;  %p39_p2 = scmp.eq.s32.totalorder %s1928_s21, 0 }
  0x50   : > { %s2082_s8 = scalar_select %p29_p13, %s1924_s20, %s31_s11  }
  0x51   : > { %p40_p5 = por %p39_p2, %p38_p1  ;;  %p3140_p4 = scmp.eq.s32.totalorder %s1995_s22, 1 }
  0x52   : > { %3139 = sst [smem:[#allocation26_spill]] %s2082_s8  ;;  %p1702_p8 = scmp.lt.s32.totalorder %s1928_s21, 2 }
  0x53   : > { %p2086_p6 = por %p3140_p4, %p38_p1  ;;  %s222_s13 = sand.u32 1, %s1924_s20  }
  0x54   : > { %s1534_s15 = sshll.u32 %s222_s13, 6  ;;  %s1639_s14 = sshll.u32 %s1928_s21, 10 }
  0x55   : > { %s3141_s12 = scalar_select %p2086_p6, 1, 0 }
  0x56   : > { %s3143_s0 = sld [smem:[#allocation46_spill]]  ;;  %s226_s26 = scalar_lea.vmem [#allocation3], %s1534_s15 }
  0x57   : > { %3142 = sst [smem:[#allocation27_spill]] %s3141_s12  ;;  %s233_s27 = sshll.u32 %s226_s26, 4  ;;  %s2098_s27 = int_to_ptr.vmem [resolvable:$true] %s233_s27 }
  0x58   : > { %p2100_p11 = pnand %p1702_p8, %p40_p5  ;;  %s2104_s30 = scalar_lea.sflag [#allocation4], %s222_s13 }
  0x5a   : > { %p1822_p10 = pneg %p2100_p11 }
  0x5c   : > { %s2096_s23 = scalar_lea.hbm %s3143_s0, %s1639_s14  ;;  %s1825_s11 = scalar_lea.hbm %s3143_s0, 2048 }
  0x5d   : > { %s1820_s6 = scalar_lea.hbm %s2096_s23, 1024  ;;  %p1826_p9 = scmp.lt.u32.totalorder %s2096_s23, %s3143_s0 }
  0x5e   : > { %p1821_p7 = scmp.ne.s32.totalorder %s2096_s23, %s1820_s6  ;;  %p1827_p3 = scmp.lt.u32.totalorder %s1825_s11, %s1820_s6 }
  0x5f   : > { %p1829_p1 = scmp.lt.u32.totalorder %s1820_s6, %s2096_s23 }
  0x60   : > { %p1823_p12 = pnand %p1822_p10, %p1821_p7  ;;  %p1828_p13 = por %p1827_p3, %p1826_p9 }
  0x62   : > { %p1824_p0 = pneg %p1823_p12  ;;  %p1830_p2 = por %p1829_p1, %p1828_p13 }
  0x64   : > { %p1831_p5 = pnand %p1830_p2, %p1824_p0 }
  0x66   : > { %1834 = shalt.err (!%p1831_p5)
}
  0x67   : > { %s1835_s13 = scalar_lea.vmem %s2098_s27, 1024  ;;  %s1934_s16 = smov [#allocation3]  }
  0x68   : > { %p1836_p4 = scmp.ne.s32.totalorder %s2098_s27, %s1835_s13  ;;  %s1840_s17 = sshll.u32 %s1934_s16, 4  ;;  %s1841_s17 = int_to_ptr.vmem [resolvable:$false] %s1840_s17 }
  0x69   : > { %s1842_s26 = scalar_lea.vmem %s1841_s17, 2048  ;;  %p1843_p12 = scmp.lt.s32.totalorder %s2098_s27, %s1841_s17 }
  0x6a   : > { %p1838_p8 = pnand %p1836_p4, %p1822_p10  ;;  %p1844_p9 = scmp.lt.s32.totalorder %s1842_s26, %s1835_s13 }
  0x6c   : > { %p1839_p7 = pneg %p1838_p8  ;;  %p1845_p3 = por %p1844_p9, %p1843_p12 }
  0x6e   : > { %p1846_p13 = pnand %p1845_p3, %p1839_p7 }
  0x70   : > { %1849 = shalt.err (!%p1846_p13)
}
  0x71   : > { %s1935_s6 = smov 128   ;;  %s1936_s7 = smov 8  }
  0x72   : > { %1693 = dma.hbm_to_vmem [thread:$0]  (!%p2100_p11), %s2096_s23, 1024, %s2098_s27, %s2104_s30, %s1935_s6, %s1935_s6, %s1936_s7  }
  0x73   : > { %p3145_p10 = scmp.ne.s32.totalorder %s3133_s29, 0 }
  0x75   : > { %245 = sbr.rel (%p3145_p10) target bundleno = 760 (0x2f8), region = 40 }
  0x7c   : > { %s2135_s10 = sand.u32 1, %s1920_s19   ;;  %p3147_p0 = scmp.ne.s32.totalorder %s3129_s24, 0 }
  0x7d   : > { %3146 = sst [smem:[#allocation28_spill]] %s2135_s10  ;;  %s1538_s11 = sshll.u32 %s2135_s10, 6 }
  0x7e   : > { %s248_s15 = scalar_lea.sflag [#allocation4], %s2135_s10  ;;  %s2139_s14 = scalar_lea.vmem [#allocation3], %s1538_s11 }
  0x7f   : > { %1895 = dma.done.wait (%p3147_p0), %s248_s15, 1024  }
  0x80   : > { %1897 = vsyncadd (%p3147_p0), %s248_s15, 4294966272  ;;  %p3148_p11 = scmp.eq.s32.totalorder %s1995_s22, 0 }
  0x82   : > { %1899 = dma.done.wait (%p3148_p11), [#allocation6], 16   ;;  %p3149_p1 = pmov %p3148_p11 }
  0x84   : > { %1901 = vsyncadd (%p3149_p1), [#allocation6], 4294967280  ;;  %p3150_p2 = pmov %p3149_p1 }
  0x85   : > { %p3151_p5 = pmov %p3149_p1 }
  0x86   : > { %1903 = dma.done.wait (%p3150_p2), [#allocation9], 32  }
  0x87   : > { %1905 = vsyncadd (%p3151_p5), [#allocation9], 4294967264  ;;  %p3152_p4 = pmov %p3149_p1 }
  0x88   : > { %p3153_p8 = pmov %p3149_p1 }
  0x89   : > { %1907 = dma.done.wait (%p3152_p4), [#allocation12], 16  }
  0x8a   : > { %1909 = vsyncadd (%p3153_p8), [#allocation12], 4294967280 }
  0x8b   : > { %272 = sfence }
  0x8c   : > { %v309_v0 = vld [vmem:[%s2139_s14] sm:$0xff]  ;;  %v311_v1 = vld [vmem:[%s2139_s14 + $0x10] sm:$0xff]  ;;  %vm295_vm0 = vcmask 146432   ;;  %s1937_s24 = smov 1   ;;  %vm298_vm1 = vcmask 140288   ;;  %v310_v2 = vld [vmem:[%s2139_s14 + $0x8] sm:$0xff] }
  0x8d   : > { %325 = vrot.lane.b32.xlu0 %v309_v0, %s1937_s24  ;;  %329 = vrot.lane.b32.xlu1 %v311_v1, %s1937_s24  ;;  %v312_v3 = vld [vmem:[%s2139_s14 + $0x18] sm:$0xff]  ;;  %v1938_v4 = vmov 0.0   ;;  %v313_v5 = vld [vmem:[%s2139_s14 + $0x20] sm:$0xff]  ;;  %vm349_vm2 = vcmask 138248   ;;  %s1544_s29 = sld [smem:[#allocation7 + $0x4]]  ;;  %s2167_s23 = sld [smem:[#allocation7 + $0x8]] }
  0x8e   : > { %296 = vst.msk [vmem:[#allocation2] sm:$0xff] %vm295_vm0, %v1938_v4  ;;  %297 = vst.msk [vmem:[#allocation2 + $0x8] sm:$0xff] %vm295_vm0, %v1938_v4  ;;  %v314_v6 = vld [vmem:[%s2139_s14 + $0x28] sm:$0xff]  ;;  %v315_v7 = vld [vmem:[%s2139_s14 + $0x30] sm:$0xff]  ;;  %s2169_s27 = sld [smem:[#allocation7 + $0x5]]  ;;  %s2179_s28 = sld [smem:[#allocation7 + $0x9]] }
  0x8f   : > { %300 = vst.msk [vmem:[#allocation2 + $0x18] sm:$0xff] %vm295_vm0, %v1938_v4  ;;  %301 = vst.msk [vmem:[#allocation2 + $0x20] sm:$0xff] %vm295_vm0, %v1938_v4  ;;  %v316_v8 = vld [vmem:[%s2139_s14 + $0x38] sm:$0xff]  ;;  %s3070_s30 = smov 127   ;;  %s2187_s13 = sld [smem:[#allocation7 + $0x6]]  ;;  %vm403_vm3 = vcmask 1046528  }
  0x90   : > { %303 = vst.msk [vmem:[#allocation2 + $0x30] sm:$0xff] %vm295_vm0, %v1938_v4  ;;  %304 = vst.msk [vmem:[#allocation2 + $0x38] sm:$0xff] %vm295_vm0, %v1938_v4  ;;  %s3068_s16 = smov 126   ;;  %s2196_s17 = sld [smem:[#allocation7 + $0xa]]  ;;  %vm463_vm4 = vcmask 1045504   ;;  %vm519_vm5 = vcmask 130048  }
  0x91   : > { %306 = vst.msk [vmem:[#allocation2 + $0x48] sm:$0xff] %vm295_vm0, %v1938_v4  ;;  %307 = vst.msk [vmem:[#allocation2 + $0x50] sm:$0xff] %vm295_vm0, %v1938_v4  ;;  %327 = vrot.lane.b32.xlu0 %v310_v2, %s1937_s24  ;;  %331 = vrot.lane.b32.xlu1 %v312_v3, %s1937_s24  ;;  %s2199_s26 = sld [smem:[#allocation7 + $0x10]]  ;;  %s2201_s6 = sld [smem:[#allocation7 + $0x14]] }
  0x92   : > { %299 = vst.msk [vmem:[#allocation2 + $0x10] sm:$0x3] %vm298_vm1, %v1938_v4  ;;  %302 = vst.msk [vmem:[#allocation2 + $0x28] sm:$0x3] %vm298_vm1, %v1938_v4  ;;  %s2206_s7 = sld [smem:[#allocation7 + $0x11]]  ;;  %s2208_s11 = sld [smem:[#allocation7 + $0x15]] }
  0x93   : > { %305 = vst.msk [vmem:[#allocation2 + $0x40] sm:$0x3] %vm298_vm1, %v1938_v4  ;;  %308 = vst.msk [vmem:[#allocation2 + $0x58] sm:$0x3] %vm298_vm1, %v1938_v4  ;;  %v368_v13 = vstv %s1544_s29  ;;  %v382_v18 = vstv %s2167_s23  ;;  %s2212_s15 = sld [smem:[#allocation7 + $0x12]]  ;;  %s2214_s14 = sld [smem:[#allocation7 + $0x1c]] }
  0x94   : > { %v569_v21 = vstv %s2169_s27  ;;  %v583_v29 = vstv %s2179_s28  ;;  %s2221_s29 = sld [smem:[#allocation7 + $0xb]]  ;;  %s1567_s23 = sld [smem:[#allocation7 + $0x16]] }
  0x95   : > { %333 = vrot.lane.b32.xlu0 %v313_v5, %s1937_s24  ;;  %335 = vrot.lane.b32.xlu1 %v314_v6, %s1937_s24  ;;  %v767_v31 = vstv %s2187_s13  ;;  %s1546_s27 = sld [smem:[#allocation7 + $0xc]]  ;;  %s2225_s28 = sld [smem:[#allocation7 + $0x13]] }
  0x96   : > { %s3154_s0 = smov 126   ;;  %s2230_s13 = sld [smem:[#allocation7 + $0xd]]  ;;  %v781_v36 = vstv %s2196_s17 }
  0x97   : > { %s2232_s1 = sld [smem:[#allocation7 + $0x19]]  ;;  %s1565_s2 = sld [smem:[#allocation7 + $0xe]]  ;;  %v414_v42 = vstv %s2199_s26  ;;  %v435_v43 = vstv %s2201_s6 }
  0x98   : > { %s3155_s3 = smov 127   ;;  %s2244_s4 = sld [smem:[#allocation7 + $0xf]]  ;;  %v614_v44 = vstv %s2206_s7  ;;  %v635_v45 = vstv %s2208_s11 }
  0x99   : > { %337 = vrot.lane.b32.xlu0 %v315_v7, %s1937_s24  ;;  %339 = vrot.lane.b32.xlu1 %v316_v8, %s1937_s24  ;;  %s2219_s24 = sld [smem:[#allocation7 + $0x7]]  ;;  %v812_v46 = vstv %s2212_s15  ;;  %v2255_v47 = vstv %s2214_s14  ;;  %s1569_s17 = sld [smem:[#allocation7 + $0x1e]] }
  0x9a   : > { %v979_v48 = vstv %s2221_s29  ;;  %v2258_v49 = vstv %s1567_s23  ;;  %s1570_s26 = sld [smem:[#allocation7 + $0x22]]  ;;  %s1579_s6 = sld [smem:[#allocation7 + $0x1f]] }
  0x9b   : > { %v2260_v50 = vstv %s1546_s27  ;;  %v2270_v54 = vstv %s2225_s28  ;;  %s1580_s7 = sld [smem:[#allocation7 + $0x23]]  ;;  %s361_s11 = sld [smem:[#allocation7]] }
  0x9c   : > { %v2273_v55 = vstv %s2230_s13  ;;  %s1552_s15 = sld [smem:[#allocation7 + $0x1]]  ;;  %s515_s14 = sld [smem:[#allocation8]] }
  0x9d   : > { %v2278_v58 = vstv %s1565_s2  ;;  %v2281_v59 = vstv %s2232_s1  ;;  %s2306_s1 = sld [smem:[#allocation7 + $0x1b]]  ;;  %s2430_s2 = sld [smem:[#allocation7 + $0x20]] }
  0x9e   : > { %s2600_s29 = sld [smem:[#allocation8 + $0x2]]  ;;  %s2610_s23 = sld [smem:[#allocation8 + $0x3]] }
  0x9f   : > { %v965_v41 = vstv %s2219_s24  ;;  %s1561_s24 = sld [smem:[#allocation8 + $0x1]]  ;;  %s2655_s27 = sld [smem:[#allocation10]] }
  0xa0   : > { %s2657_s28 = sld [smem:[#allocation10 + $0x4]]  ;;  %s2659_s13 = sld [smem:[#allocation10 + $0x8]] }
  0xa1   : > { %s2695_s8 = sld [smem:[#allocation10 + $0xe]]  ;;  %s2697_s19 = sld [smem:[#allocation10 + $0x12]] }
  0xa2   : > { %s2701_s21 = sld [smem:[#allocation10 + $0x16]]  ;;  %s2705_s18 = sld [smem:[#allocation10 + $0x1a]] }
  0xa3   : > { %s2707_s12 = sld [smem:[#allocation10 + $0x1e]]  ;;  %s2713_s5 = sld [smem:[#allocation10 + $0x3]] }
  0xa4   : > { %s2719_s22 = sld [smem:[#allocation10 + $0x7]]  ;;  %s2721_s10 = sld [smem:[#allocation11 + $0x1]] }
  0xa5   : > { %3156 = sst [smem:[#allocation29_spill]] %s2655_s27 }
  0xa6   : > { %3157 = sst [smem:[#allocation30_spill]] %s2657_s28 }
  0xa9   : > { %3165 = sst [smem:[#allocation38_spill]] %s2713_s5 }
  0xff   : > { %v326_v9 = vpop.permute.xlu0 %325  ;;  %v330_v10 = vpop.permute.xlu1 %329 }
 0x100   : > { %350 = vst.msk [vmem:[#allocation2 + $0x1] sm:$0xff] %vm349_vm2, %v326_v9  ;;  %352 = vst.msk [vmem:[#allocation2 + $0x19] sm:$0xff] %vm349_vm2, %v330_v10  ;;  %v2304_v10 = vstv %s2244_s4  ;;  %s2437_s4 = sld [smem:[#allocation7 + $0x1d]] }
 0x103   : > { %v328_v11 = vpop.permute.xlu0 %327  ;;  %v332_v12 = vpop.permute.xlu1 %331 }
 0x104   : > { %351 = vst.msk [vmem:[#allocation2 + $0x9] sm:$0xff] %vm349_vm2, %v328_v11  ;;  %353 = vst.msk [vmem:[#allocation2 + $0x21] sm:$0xff] %vm349_vm2, %v332_v12 }
 0x107   : > { %v2173_v14 = vld [vmem:[#allocation2] sm:$0xff]  ;;  %v334_v15 = vpop.permute.xlu0 %333  ;;  %v336_v16 = vpop.permute.xlu1 %335  ;;  %v2184_v20 = vld [vmem:[#allocation2 + $0x18] sm:$0xff] }
 0x108   : > { %v369_v17 = vmul.f32 %v368_v13, %v2173_v14  ;;  %354 = vst.msk [vmem:[#allocation2 + $0x31] sm:$0xff] %vm349_vm2, %v334_v15  ;;  %355 = vst.msk [vmem:[#allocation2 + $0x39] sm:$0xff] %vm349_vm2, %v336_v16  ;;  %v383_v25 = vmul.f32 %v382_v18, %v2173_v14  ;;  %v570_v26 = vmul.f32 %v569_v21, %v2184_v20 }
 0x109   : > { %v584_v33 = vmul.f32 %v583_v29, %v2184_v20  ;;  %v415_v57 = vmul.f32 %v414_v42, %v2173_v14  ;;  %v436_v62 = vmul.f32 %v435_v43, %v2173_v14  ;;  %v615_v63 = vmul.f32 %v614_v44, %v2184_v20 }
 0x10a   : > { %373 = vrot.lane.b32.xlu0 %v369_v17, %s3070_s30  ;;  %v636_v1 = vmul.f32 %v635_v45, %v2184_v20  ;;  %v475_v15 = vmul.f32 %v2255_v47, %v2173_v14 }
 0x10b   : > { %v2182_v19 = vld [vmem:[#allocation2 + $0x8] sm:$0xff]  ;;  %v338_v22 = vpop.permute.xlu0 %337  ;;  %v340_v23 = vpop.permute.xlu1 %339  ;;  %v2203_v28 = vld [vmem:[#allocation2 + $0x20] sm:$0xff]  ;;  %v2267_v53 = vld [vmem:[#allocation2 + $0x10] sm:$0x3]  ;;  %v421_v11 = vrot.slane %v415_v57, 1  ;;  %v2339_v57 = vstv %s2306_s1  ;;  %s2661_s1 = sld [smem:[#allocation10 + $0xc]] }
 0x10c   : > { %v370_v24 = vmul.f32 %v368_v13, %v2182_v19  ;;  %356 = vst.msk [vmem:[#allocation2 + $0x49] sm:$0xff] %vm349_vm2, %v338_v22  ;;  %357 = vst.msk [vmem:[#allocation2 + $0x51] sm:$0xff] %vm349_vm2, %v340_v23  ;;  %v384_v27 = vmul.f32 %v382_v18, %v2182_v19  ;;  %v571_v32 = vmul.f32 %v569_v21, %v2203_v28  ;;  %v2289_v0 = vld [vmem:[#allocation2 + $0x28] sm:$0x3] }
 0x10d   : > { %v585_v37 = vmul.f32 %v583_v29, %v2203_v28  ;;  %v416_v2 = vmul.f32 %v414_v42, %v2182_v19  ;;  %v417_v3 = vmul.f32 %v414_v42, %v2267_v53  ;;  %v437_v4 = vmul.f32 %v435_v43, %v2182_v19 }
 0x10e   : > { %375 = vrot.lane.b32.xlu1 %v370_v24, %s3070_s30  ;;  %387 = vrot.lane.b32.xlu0 %v383_v25, %s3068_s16  ;;  %v438_v5 = vmul.f32 %v435_v43, %v2267_v53  ;;  %v616_v9 = vmul.f32 %v614_v44, %v2203_v28  ;;  %v617_v12 = vmul.f32 %v614_v44, %v2289_v0  ;;  %v442_v24 = vrot.slane %v436_v62, 1 }
 0x10f   : > { %v2216_v30 = vld [vmem:[#allocation2 + $0x30] sm:$0xff]  ;;  %v2234_v35 = vld [vmem:[#allocation2 + $0x38] sm:$0xff]  ;;  %v2296_v6 = vld [vmem:[#allocation2 + $0x40] sm:$0x3]  ;;  %v637_v13 = vmul.f32 %v635_v45, %v2203_v28  ;;  %v638_v16 = vmul.f32 %v635_v45, %v2289_v0  ;;  %v422_v22 = vrot.slane %v416_v2, 1  ;;  %v424_v23 = vrot.slane %v417_v3, 1 }
 0x110   : > { %v768_v34 = vmul.f32 %v767_v31, %v2216_v30  ;;  %v769_v38 = vmul.f32 %v767_v31, %v2234_v35  ;;  %v782_v39 = vmul.f32 %v781_v36, %v2216_v30  ;;  %v783_v61 = vmul.f32 %v781_v36, %v2234_v35 }
 0x111   : > { %v813_v17 = vmul.f32 %v812_v46, %v2216_v30  ;;  %v814_v18 = vmul.f32 %v812_v46, %v2234_v35  ;;  %v815_v21 = vmul.f32 %v812_v46, %v2296_v6  ;;  %v2318_v25 = vmul.f32 %v2255_v47, %v2182_v19 }
 0x112   : > { %389 = vrot.lane.b32.xlu1 %v384_v27, %s3068_s16  ;;  %574 = vrot.lane.b32.xlu0 %v570_v26, %s3070_s30  ;;  %s1549_s16 = sld [smem:[#allocation7 + $0x18]]  ;;  %v443_v26 = vrot.slane %v437_v4, 1  ;;  %v445_v27 = vrot.slane %v438_v5, 1  ;;  %v621_v29 = vrot.slane %v615_v63, 1  ;;  %v622_v31 = vrot.slane %v616_v9, 1 }
 0x113   : > { %v2246_v40 = vld [vmem:[#allocation2 + $0x48] sm:$0xff]  ;;  %v2275_v56 = vld [vmem:[#allocation2 + $0x50] sm:$0xff]  ;;  %v643_v36 = vrot.slane %v637_v13, 1  ;;  %v423_v42 = vsel %vm403_vm3, %v421_v11, %v422_v22  ;;  %v425_v43 = vsel %vm403_vm3, %v422_v22, %v424_v23  ;;  %v482_v44 = vrot.slane %v2318_v25, 2 }
 0x114   : > { %v966_v52 = vmul.f32 %v965_v41, %v2246_v40  ;;  %v967_v7 = vmul.f32 %v965_v41, %v2275_v56  ;;  %v980_v8 = vmul.f32 %v979_v48, %v2246_v40  ;;  %v822_v41 = vrot.slane %v815_v21, 1 }
 0x115   : > { %v2328_v45 = vmul.f32 %v2255_v47, %v2267_v53  ;;  %v444_v46 = vsel %vm403_vm3, %v442_v24, %v443_v26  ;;  %v481_v63 = vrot.slane %v475_v15, 2  ;;  %v2355_v4 = vmul.f32 %v2258_v49, %v2234_v35 }
 0x116   : > { %576 = vrot.lane.b32.xlu1 %v571_v32, %s3070_s30  ;;  %588 = vrot.lane.b32.xlu0 %v584_v33, %s3154_s0  ;;  %s2237_s30 = sld [smem:[#allocation7 + $0x1a]]  ;;  %v981_v32 = vmul.f32 %v979_v48, %v2275_v56  ;;  %v624_v33 = vrot.slane %v617_v12, 1  ;;  %v446_v48 = vsel %vm403_vm3, %v443_v26, %v445_v27  ;;  %v2369_v9 = vmul.f32 %v2270_v54, %v2246_v40 }
 0x117   : > { %v2360_v5 = vsel %vm463_vm4, %v481_v63, %v482_v44  ;;  %v397_v12 = vmul.f32 %v2260_v50, %v2173_v14  ;;  %v398_v13 = vmul.f32 %v2260_v50, %v2182_v19  ;;  %v598_v15 = vmul.f32 %v2273_v55, %v2184_v20 }
 0x118   : > { %v2262_v51 = vstv %s1549_s16  ;;  %v625_v62 = vsel %vm403_vm3, %v622_v31, %v624_v33  ;;  %v797_v24 = vmul.f32 %v2278_v58, %v2234_v35  ;;  %s1560_s16 = sld [smem:[#allocation7 + $0x21]] }
 0x119   : > { %v404_v21 = vrot.slane %v397_v12, 1  ;;  %v405_v22 = vrot.slane %v398_v13, 1  ;;  %v604_v26 = vrot.slane %v598_v15, 1 }
 0x11a   : > { %590 = vrot.lane.b32.xlu1 %v585_v37, %s3154_s0  ;;  %772 = vrot.lane.b32.xlu0 %v768_v34, %s3155_s3  ;;  %v642_v34 = vrot.slane %v636_v1, 1  ;;  %v645_v37 = vrot.slane %v638_v16, 1  ;;  %v599_v16 = vmul.f32 %v2273_v55, %v2203_v28  ;;  %v803_v33 = vrot.slane %v797_v24, 1 }
 0x11c   : > { %v2284_v60 = vstv %s2237_s30  ;;  %v644_v47 = vsel %vm403_vm3, %v642_v34, %v643_v36  ;;  %v2345_v1 = vsel %vm403_vm3, %v643_v36, %v645_v37  ;;  %v798_v34 = vmul.f32 %v2278_v58, %v2296_v6  ;;  %s1577_s30 = sld [smem:[#allocation7 + $0x17]] }
 0x11e   : > { %774 = vrot.lane.b32.xlu1 %v769_v38, %s3155_s3  ;;  %786 = vrot.lane.b32.xlu0 %v782_v39, %s3154_s0  ;;  %v819_v38 = vrot.slane %v813_v17, 1  ;;  %v820_v39 = vrot.slane %v814_v18, 1  ;;  %v600_v17 = vmul.f32 %v2273_v55, %v2289_v0  ;;  %v796_v18 = vmul.f32 %v2278_v58, %v2216_v30 }
 0x11f   : > { %v2395_v55 = vsel %vm403_vm3, %v404_v21, %v405_v22  ;;  %v994_v58 = vmul.f32 %v2304_v10, %v2246_v40  ;;  %v855_v21 = vmul.f32 %v2284_v60, %v2216_v30 }
 0x120   : > { %v2348_v2 = vsel %vm403_vm3, %v819_v38, %v820_v39  ;;  %v2351_v3 = vsel %vm403_vm3, %v820_v39, %v822_v41  ;;  %v607_v27 = vrot.slane %v600_v17, 1  ;;  %v457_v38 = vmul.f32 %v2262_v51, %v2173_v14 }
 0x121   : > { %v458_v39 = vmul.f32 %v2262_v51, %v2182_v19 }
 0x122   : > { %788 = vrot.lane.b32.xlu1 %v783_v61, %s3154_s0  ;;  %970 = vrot.lane.b32.xlu0 %v966_v52, %s3155_s3  ;;  %v2336_v52 = vmul.f32 %v2258_v49, %v2216_v30  ;;  %v623_v61 = vsel %vm403_vm3, %v621_v29, %v622_v31  ;;  %v802_v29 = vrot.slane %v796_v18, 1  ;;  %v2392_v31 = vld [vmem:[#allocation2 + $0x58] sm:$0x3]  ;;  %v659_v18 = vmul.f32 %v2281_v59, %v2289_v0 }
 0x123   : > { %v996_v63 = vmul.f32 %v2304_v10, %v2392_v31 }
 0x124   : > { %v840_v11 = vrot.slane %v2336_v52, 1  ;;  %v2413_v41 = vsel %vm403_vm3, %v802_v29, %v803_v33  ;;  %v1053_v29 = vmul.f32 %v2339_v57, %v2246_v40 }
 0x125   : > { %v1003_v17 = vrot.slane %v996_v63, 1 }
 0x126   : > { %972 = vrot.lane.b32.xlu1 %v967_v7, %s3155_s3  ;;  %984 = vrot.lane.b32.xlu0 %v980_v8, %s3154_s0  ;;  %v484_v7 = vrot.slane %v2328_v45, 2  ;;  %v2365_v8 = vmul.f32 %v2258_v49, %v2296_v6  ;;  %v399_v49 = vmul.f32 %v2260_v50, %v2267_v53  ;;  %v605_v50 = vrot.slane %v599_v16, 1 }
 0x128   : > { %v407_v23 = vrot.slane %v399_v49, 1  ;;  %v2403_v36 = vsel %vm403_vm3, %v604_v26, %v605_v50  ;;  %v2406_v37 = vsel %vm403_vm3, %v605_v50, %v607_v27  ;;  %v657_v49 = vmul.f32 %v2281_v59, %v2184_v20 }
 0x129   : > { %v856_v26 = vmul.f32 %v2284_v60, %v2234_v35  ;;  %v861_v50 = vrot.slane %v855_v21, 2  ;;  %v857_v27 = vmul.f32 %v2284_v60, %v2296_v6 }
 0x12a   : > { %986 = vrot.lane.b32.xlu1 %v981_v32, %s3154_s0  ;;  %426 = vrot.lane.b32.xlu0 %v423_v42, %s3155_s3  ;;  %v2398_v32 = vsel %vm403_vm3, %v405_v22, %v407_v23  ;;  %v805_v42 = vrot.slane %v798_v34, 1 }
 0x12b   : > { %v862_v34 = vrot.slane %v856_v26, 2  ;;  %v864_v60 = vrot.slane %v857_v27, 2 }
 0x12c   : > { %v2426_v12 = vsel %vm403_vm3, %v803_v33, %v805_v42  ;;  %v1059_v42 = vrot.slane %v1053_v29, 2 }
 0x12e   : > { %428 = vrot.lane.b32.xlu1 %v425_v43, %s3155_s3  ;;  %447 = vrot.lane.b32.xlu0 %v444_v46, %s3154_s0  ;;  %v459_v43 = vmul.f32 %v2262_v51, %v2267_v53  ;;  %v464_v46 = vrot.slane %v457_v38, 2  ;;  %v1000_v51 = vrot.slane %v994_v58, 1  ;;  %v1054_v38 = vmul.f32 %v2339_v57, %v2275_v56 }
 0x12f   : > { %v2476_v58 = vsel %vm463_vm4, %v861_v50, %v862_v34 }
 0x130   : > { %v467_v13 = vrot.slane %v459_v43, 2  ;;  %v1012_v43 = vmul.f32 %v2270_v54, %v2275_v56 }
 0x132   : > { %449 = vrot.lane.b32.xlu1 %v446_v48, %s3154_s0  ;;  %626 = vrot.lane.b32.xlu0 %v623_v61, %s3155_s3  ;;  %v465_v48 = vrot.slane %v458_v39, 2  ;;  %v995_v61 = vmul.f32 %v2304_v10, %v2275_v56  ;;  %v658_v10 = vmul.f32 %v2281_v59, %v2203_v28  ;;  %v666_v59 = vrot.slane %v659_v18, 2 }
 0x133   : > { %v694_v18 = vstv %s1560_s16  ;;  %s2667_s16 = sld [smem:[#allocation10 + $0x18]] }
 0x134   : > { %v2433_v15 = vsel %vm463_vm4, %v464_v46, %v465_v48  ;;  %v1001_v16 = vrot.slane %v995_v61, 1  ;;  %v664_v24 = vrot.slane %v658_v10, 2  ;;  %v1060_v46 = vrot.slane %v1054_v38, 2 }
 0x135   : > { %v1018_v10 = vrot.slane %v1012_v43, 1 }
 0x136   : > { %628 = vrot.lane.b32.xlu1 %v625_v62, %s3155_s3  ;;  %647 = vrot.lane.b32.xlu0 %v644_v47, %s3154_s0  ;;  %v2440_v62 = vsel %vm463_vm4, %v465_v48, %v467_v13  ;;  %v663_v47 = vrot.slane %v657_v49, 2  ;;  %v2447_v22 = vsel %vm403_vm3, %v1000_v51, %v1001_v16  ;;  %v2450_v23 = vsel %vm403_vm3, %v1001_v16, %v1003_v17 }
 0x137   : > { %v2471_v39 = vsel %vm463_vm4, %v664_v24, %v666_v59  ;;  %v2487_v61 = vsel %vm463_vm4, %v1059_v42, %v1060_v46  ;;  %v673_v51 = vstv %s2437_s4  ;;  %v843_v16 = vrot.slane %v2365_v8, 1  ;;  %s2663_s4 = sld [smem:[#allocation10 + $0x10]] }
 0x138   : > { %v2463_v33 = vsel %vm463_vm4, %v663_v47, %v664_v24  ;;  %v1017_v17 = vrot.slane %v2369_v9, 1  ;;  %v674_v45 = vmul.f32 %v673_v51, %v2184_v20  ;;  %v675_v8 = vmul.f32 %v673_v51, %v2203_v28 }
 0x139   : > { %v1031_v47 = vstv %s1577_s30  ;;  %v676_v59 = vmul.f32 %v673_v51, %v2289_v0  ;;  %s2665_s30 = sld [smem:[#allocation10 + $0x14]]  ;;  %3159 = sst [smem:[#allocation32_spill]] %s2667_s16 }
 0x13a   : > { %649 = vrot.lane.b32.xlu1 %v2345_v1, %s3154_s0  ;;  %824 = vrot.lane.b32.xlu0 %v2348_v2, %s3155_s3  ;;  %v1055_v1 = vmul.f32 %v2339_v57, %v2392_v31  ;;  %v841_v2 = vrot.slane %v2355_v4, 1  ;;  %v2483_v57 = vsel %vm463_vm4, %v862_v34, %v864_v60  ;;  %v495_v4 = vstv %s2430_s2 }
 0x13b   : > { %v497_v13 = vmul.f32 %v495_v4, %v2182_v19  ;;  %v496_v25 = vmul.f32 %v495_v4, %v2173_v14  ;;  %v1019_v52 = vsel %vm403_vm3, %v1017_v17, %v1018_v10  ;;  %v680_v26 = vrot.slane %v674_v45, 2 }
 0x13c   : > { %v1062_v48 = vrot.slane %v1055_v1, 2  ;;  %v842_v49 = vsel %vm403_vm3, %v840_v11, %v841_v2  ;;  %v498_v11 = vmul.f32 %v495_v4, %v2267_v53  ;;  %v681_v53 = vrot.slane %v675_v8, 2 }
 0x13d   : > { %v502_v9 = vrot.slane %v496_v25, 2  ;;  %v1032_v27 = vmul.f32 %v1031_v47, %v2246_v40  ;;  %v1033_v29 = vmul.f32 %v1031_v47, %v2275_v56  ;;  %v683_v34 = vrot.slane %v676_v59, 2 }
 0x13e   : > { %826 = vrot.lane.b32.xlu1 %v2351_v3, %s3155_s3  ;;  %486 = vrot.lane.b32.xlu0 %v2360_v5, %s3155_s3  ;;  %v2490_v63 = vsel %vm463_vm4, %v1060_v46, %v1062_v48  ;;  %v485_v3 = vsel %vm463_vm4, %v482_v44, %v484_v7  ;;  %v1013_v5 = vmul.f32 %v2270_v54, %v2392_v31  ;;  %v503_v54 = vrot.slane %v497_v13, 2 }
 0x13f   : > { %v844_v7 = vsel %vm403_vm3, %v841_v2, %v843_v16  ;;  %v505_v50 = vrot.slane %v498_v11, 2  ;;  %v1034_v38 = vmul.f32 %v1031_v47, %v2392_v31  ;;  %v695_v1 = vmul.f32 %v694_v18, %v2184_v20  ;;  %3158 = sst [smem:[#allocation31_spill]] %s2665_s30 }
 0x140   : > { %v1020_v44 = vrot.slane %v1013_v5, 1  ;;  %v504_v24 = vsel %vm463_vm4, %v502_v9, %v503_v54  ;;  %v696_v2 = vmul.f32 %v694_v18, %v2203_v28  ;;  %v682_v42 = vsel %vm463_vm4, %v680_v26, %v681_v53 }
 0x141   : > { %v506_v60 = vsel %vm463_vm4, %v503_v54, %v505_v50  ;;  %v1038_v43 = vrot.slane %v1032_v27, 1  ;;  %v1039_v46 = vrot.slane %v1033_v29, 1  ;;  %v871_v48 = vstv %s1569_s17  ;;  %s2669_s17 = sld [smem:[#allocation10 + $0x1c]] }
 0x142   : > { %488 = vrot.lane.b32.xlu1 %v485_v3, %s3155_s3  ;;  %845 = vrot.lane.b32.xlu0 %v842_v49, %s3154_s0  ;;  %v1021_v21 = vsel %vm403_vm3, %v1018_v10, %v1020_v44  ;;  %v892_v4 = vstv %s1570_s26  ;;  %v684_v3 = vsel %vm463_vm4, %v681_v53, %v683_v34  ;;  %v1041_v5 = vrot.slane %v1034_v38, 1  ;;  %s2671_s26 = sld [smem:[#allocation10 + $0x1]] }
 0x143   : > { %v701_v13 = vrot.slane %v695_v1, 2  ;;  %v702_v51 = vrot.slane %v696_v2, 2  ;;  %v1040_v49 = vsel %vm403_vm3, %v1038_v43, %v1039_v46  ;;  %v697_v16 = vmul.f32 %v694_v18, %v2289_v0 }
 0x144   : > { %v872_v17 = vmul.f32 %v871_v48, %v2216_v30  ;;  %v873_v10 = vmul.f32 %v871_v48, %v2234_v35  ;;  %v1069_v25 = vstv %s1579_s6  ;;  %v1042_v44 = vsel %vm403_vm3, %v1039_v46, %v1041_v5  ;;  %s2673_s6 = sld [smem:[#allocation10 + $0x5]] }
 0x145   : > { %v703_v54 = vsel %vm463_vm4, %v701_v13, %v702_v51  ;;  %v874_v45 = vmul.f32 %v871_v48, %v2296_v6  ;;  %v894_v8 = vmul.f32 %v892_v4, %v2234_v35  ;;  %v895_v18 = vmul.f32 %v892_v4, %v2296_v6 }
 0x146   : > { %847 = vrot.lane.b32.xlu1 %v844_v7, %s3154_s0  ;;  %1022 = vrot.lane.b32.xlu0 %v1019_v52, %s3155_s3  ;;  %v893_v7 = vmul.f32 %v892_v4, %v2216_v30  ;;  %v704_v52 = vrot.slane %v697_v16, 2  ;;  %v878_v0 = vrot.slane %v872_v17, 2  ;;  %v879_v11 = vrot.slane %v873_v10, 2 }
 0x147   : > { %v881_v9 = vrot.slane %v874_v45, 2  ;;  %v900_v59 = vrot.slane %v894_v8, 2  ;;  %v1071_v50 = vmul.f32 %v1069_v25, %v2275_v56  ;;  %v1090_v53 = vstv %s1580_s7  ;;  %3160 = sst [smem:[#allocation33_spill]] %s2669_s17  ;;  %s2675_s7 = sld [smem:[#allocation10 + $0x9]] }
 0x148   : > { %v899_v47 = vrot.slane %v893_v7, 2  ;;  %v880_v26 = vsel %vm463_vm4, %v878_v0, %v879_v11  ;;  %v902_v29 = vrot.slane %v895_v18, 2  ;;  %v1072_v6 = vmul.f32 %v1069_v25, %v2392_v31  ;;  %3161 = sst [smem:[#allocation34_spill]] %s2671_s26 }
 0x149   : > { %v882_v27 = vsel %vm463_vm4, %v879_v11, %v881_v9  ;;  %v1077_v1 = vrot.slane %v1071_v50, 2  ;;  %v1091_v2 = vmul.f32 %v1090_v53, %v2246_v40  ;;  %v1093_v43 = vmul.f32 %v1090_v53, %v2392_v31 }
 0x14a   : > { %1024 = vrot.lane.b32.xlu1 %v1021_v21, %s3155_s3  ;;  %507 = vrot.lane.b32.xlu0 %v504_v24, %s3154_s0  ;;  %v1070_v21 = vmul.f32 %v1069_v25, %v2246_v40  ;;  %v705_v24 = vsel %vm463_vm4, %v702_v51, %v704_v52  ;;  %v901_v38 = vsel %vm463_vm4, %v899_v47, %v900_v59  ;;  %v1079_v48 = vrot.slane %v1072_v6, 2  ;;  %3162 = sst [smem:[#allocation35_spill]] %s2673_s6 }
 0x14b   : > { %v1097_v4 = vrot.slane %v1091_v2, 2  ;;  %v1100_v51 = vrot.slane %v1093_v43, 2  ;;  %v563_v7 = vstv %s1552_s15  ;;  %s2679_s15 = sld [smem:[#allocation10 + $0x11]] }
 0x14c   : > { %v1076_v34 = vrot.slane %v1070_v21, 2  ;;  %v1080_v5 = vsel %vm463_vm4, %v1077_v1, %v1079_v48  ;;  %v564_v47 = vmul.f32 %v563_v7, %v2184_v20 }
 0x14d   : > { %3163 = sst [smem:[#allocation36_spill]] %s2675_s7 }
 0x14e   : > { %509 = vrot.lane.b32.xlu1 %v506_v60, %s3154_s0  ;;  %685 = vrot.lane.b32.xlu0 %v682_v42, %s3155_s3  ;;  %v1092_v60 = vmul.f32 %v1090_v53, %v2275_v56  ;;  %v903_v42 = vsel %vm463_vm4, %v900_v59, %v902_v29  ;;  %v1078_v46 = vsel %vm463_vm4, %v1076_v34, %v1077_v1 }
 0x152   : > { %687 = vrot.lane.b32.xlu1 %v684_v3, %s3155_s3  ;;  %1043 = vrot.lane.b32.xlu0 %v1040_v49, %s3154_s0  ;;  %v1098_v3 = vrot.slane %v1092_v60, 2  ;;  %v362_v49 = vstv %s361_s11  ;;  %s2677_s11 = sld [smem:[#allocation10 + $0xd]] }
 0x153   : > { %v363_v17 = vmul.f32 %v362_v49, %v2173_v14 }
 0x154   : > { %v1099_v13 = vsel %vm463_vm4, %v1097_v4, %v1098_v3  ;;  %v1101_v31 = vsel %vm463_vm4, %v1098_v3, %v1100_v51 }
 0x156   : > { %1045 = vrot.lane.b32.xlu1 %v1042_v44, %s3154_s0  ;;  %706 = vrot.lane.b32.xlu0 %v703_v54, %s3154_s0  ;;  %v364_v54 = vmul.f32 %v362_v49, %v2182_v19 }
 0x158   : > { %3164 = sst [smem:[#allocation37_spill]] %s2677_s11 }
 0x15a   : > { %708 = vrot.lane.b32.xlu1 %v705_v24, %s3154_s0  ;;  %883 = vrot.lane.b32.xlu0 %v880_v26, %s3155_s3  ;;  %v565_v26 = vmul.f32 %v563_v7, %v2203_v28 }
 0x15e   : > { %885 = vrot.lane.b32.xlu1 %v882_v27, %s3155_s3  ;;  %904 = vrot.lane.b32.xlu0 %v901_v38, %s3154_s0 }
 0x162   : > { %906 = vrot.lane.b32.xlu1 %v903_v42, %s3154_s0  ;;  %1081 = vrot.lane.b32.xlu0 %v1078_v46, %s3155_s3 }
 0x166   : > { %1083 = vrot.lane.b32.xlu1 %v1080_v5, %s3155_s3  ;;  %1102 = vrot.lane.b32.xlu0 %v1099_v13, %s3154_s0  ;;  %s1562_s3 = sld [smem:[#allocation7 + $0x2]] }
 0x16a   : > { %1104 = vrot.lane.b32.xlu1 %v1101_v31, %s3154_s0  ;;  %s1572_s0 = sld [smem:[#allocation7 + $0x3]] }
 0x16c   : > { %v761_v19 = vstv %s1562_s3  ;;  %s2681_s3 = sld [smem:[#allocation10 + $0x15]] }
 0x16d   : > { %v762_v34 = vmul.f32 %v761_v19, %v2216_v30  ;;  %v763_v1 = vmul.f32 %v761_v19, %v2234_v35 }
 0x170   : > { %v959_v28 = vstv %s1572_s0  ;;  %s2683_s0 = sld [smem:[#allocation10 + $0x19]] }
 0x171   : > { %v960_v48 = vmul.f32 %v959_v28, %v2246_v40 }
 0x17c   : > { %v374_v16 = vpop.permute.xlu0 %373 }
 0x17d   : > { %v379_v10 = vadd.f32 %v374_v16, %v363_v17 }
 0x180   : > { %v376_v25 = vpop.permute.xlu1 %375  ;;  %v388_v44 = vpop.permute.xlu0 %387 }
 0x181   : > { %v393_v45 = vadd.f32 %v388_v44, %v379_v10  ;;  %v380_v52 = vadd.f32 %v376_v25, %v364_v54 }
 0x183   : > { %v411_v0 = vadd.f32 %v2395_v55, %v393_v45 }
 0x184   : > { %v390_v11 = vpop.permute.xlu1 %389  ;;  %v575_v8 = vpop.permute.xlu0 %574 }
 0x185   : > { %v394_v9 = vadd.f32 %v390_v11, %v380_v52  ;;  %v580_v18 = vadd.f32 %v575_v8, %v564_v47 }
 0x187   : > { %v412_v21 = vadd.f32 %v2398_v32, %v394_v9 }
 0x188   : > { %v577_v14 = vpop.permute.xlu1 %576  ;;  %v589_v24 = vpop.permute.xlu0 %588 }
 0x189   : > { %v594_v59 = vadd.f32 %v589_v24, %v580_v18  ;;  %v581_v50 = vadd.f32 %v577_v14, %v565_v26 }
 0x18b   : > { %v611_v53 = vadd.f32 %v2403_v36, %v594_v59 }
 0x18c   : > { %v591_v27 = vpop.permute.xlu1 %590  ;;  %v773_v55 = vpop.permute.xlu0 %772 }
 0x18d   : > { %v595_v29 = vadd.f32 %v591_v27, %v581_v50  ;;  %v778_v6 = vadd.f32 %v773_v55, %v762_v34 }
 0x18f   : > { %v612_v20 = vadd.f32 %v2406_v37, %v595_v29  ;;  %v961_v37 = vmul.f32 %v959_v28, %v2275_v56 }
 0x190   : > { %v775_v38 = vpop.permute.xlu1 %774  ;;  %v787_v32 = vpop.permute.xlu0 %786 }
 0x191   : > { %v792_v2 = vadd.f32 %v787_v32, %v778_v6  ;;  %v779_v60 = vadd.f32 %v775_v38, %v763_v1 }
 0x193   : > { %v809_v42 = vadd.f32 %v2413_v41, %v792_v2 }
 0x194   : > { %v789_v43 = vpop.permute.xlu1 %788  ;;  %v971_v46 = vpop.permute.xlu0 %970 }
 0x195   : > { %v793_v36 = vadd.f32 %v789_v43, %v779_v60  ;;  %v976_v4 = vadd.f32 %v971_v46, %v960_v48 }
 0x197   : > { %v810_v30 = vadd.f32 %v2426_v12, %v793_v36 }
 0x198   : > { %v973_v3 = vpop.permute.xlu1 %972  ;;  %v985_v5 = vpop.permute.xlu0 %984 }
 0x199   : > { %v990_v13 = vadd.f32 %v985_v5, %v976_v4  ;;  %v977_v51 = vadd.f32 %v973_v3, %v961_v37 }
 0x19b   : > { %v1007_v35 = vadd.f32 %v2447_v22, %v990_v13 }
 0x19c   : > { %v987_v31 = vpop.permute.xlu1 %986  ;;  %v427_v49 = vpop.permute.xlu0 %426 }
 0x19d   : > { %v991_v16 = vadd.f32 %v987_v31, %v977_v51  ;;  %v432_v41 = vadd.f32 %v427_v49, %v411_v0  ;;  %v715_v51 = vstv %s1561_s24  ;;  %s2689_s24 = sld [smem:[#allocation10 + $0x2]] }
 0x19f   : > { %v1008_v17 = vadd.f32 %v2450_v23, %v991_v16 }
 0x1a0   : > { %v429_v10 = vpop.permute.xlu1 %428  ;;  %v448_v25 = vpop.permute.xlu0 %447 }
 0x1a1   : > { %v453_v40 = vadd.f32 %v448_v25, %v432_v41  ;;  %v433_v44 = vadd.f32 %v429_v10, %v412_v21 }
 0x1a3   : > { %v471_v12 = vadd.f32 %v2433_v15, %v453_v40 }
 0x1a4   : > { %v450_v54 = vpop.permute.xlu1 %449  ;;  %v627_v45 = vpop.permute.xlu0 %626 }
 0x1a5   : > { %v454_v7 = vadd.f32 %v450_v54, %v433_v44  ;;  %v632_v56 = vadd.f32 %v627_v45, %v611_v53  ;;  %v913_v44 = vstv %s2600_s29  ;;  %s2691_s29 = sld [smem:[#allocation10 + $0x6]] }
 0x1a7   : > { %v472_v52 = vadd.f32 %v2440_v62, %v454_v7 }
 0x1a8   : > { %v629_v11 = vpop.permute.xlu1 %628  ;;  %v648_v22 = vpop.permute.xlu0 %647 }
 0x1a9   : > { %v653_v8 = vadd.f32 %v648_v22, %v632_v56  ;;  %v633_v9 = vadd.f32 %v629_v11, %v612_v20 }
 0x1ab   : > { %v670_v0 = vadd.f32 %v2463_v33, %v653_v8 }
 0x1ac   : > { %v650_v47 = vpop.permute.xlu1 %649  ;;  %v825_v23 = vpop.permute.xlu0 %824 }
 0x1ad   : > { %v654_v18 = vadd.f32 %v650_v47, %v633_v9  ;;  %v830_v15 = vadd.f32 %v825_v23, %v809_v42 }
 0x1af   : > { %v671_v14 = vadd.f32 %v2471_v39, %v654_v18  ;;  %v516_v39 = vstv %s515_s14  ;;  %s2687_s14 = sld [smem:[#allocation10 + $0x1d]] }
 0x1b0   : > { %v827_v21 = vpop.permute.xlu1 %826  ;;  %v487_v24 = vpop.permute.xlu0 %486 }
 0x1b1   : > { %v831_v50 = vadd.f32 %v827_v21, %v810_v30  ;;  %v492_v29 = vadd.f32 %v487_v24, %v471_v12 }
 0x1b4   : > { %v489_v26 = vpop.permute.xlu1 %488  ;;  %v846_v59 = vpop.permute.xlu0 %845 }
 0x1b5   : > { %v851_v19 = vadd.f32 %v846_v59, %v830_v15  ;;  %v493_v38 = vadd.f32 %v489_v26, %v472_v52  ;;  %v1111_v59 = vstv %s2610_s23  ;;  %s2693_s23 = sld [smem:[#allocation10 + $0xa]] }
 0x1b7   : > { %v868_v62 = vadd.f32 %v2476_v58, %v851_v19 }
 0x1b8   : > { %v848_v53 = vpop.permute.xlu1 %847  ;;  %v1023_v27 = vpop.permute.xlu0 %1022 }
 0x1b9   : > { %v852_v55 = vadd.f32 %v848_v53, %v831_v50  ;;  %v1028_v60 = vadd.f32 %v1023_v27, %v1007_v35 }
 0x1bb   : > { %v869_v33 = vadd.f32 %v2483_v57, %v852_v55 }
 0x1bc   : > { %v1025_v34 = vpop.permute.xlu1 %1024  ;;  %v508_v6 = vpop.permute.xlu0 %507 }
 0x1bd   : > { %v513_v20 = vadd.f32 %v508_v6, %v492_v29  ;;  %v1029_v4 = vadd.f32 %v1025_v34, %v1008_v17 }
 0x1bf   : > { %v2591_v2 = vadd.f32 %v516_v39, %v513_v20 }
 0x1c0   : > { %v510_v32 = vpop.permute.xlu1 %509  ;;  %v686_v1 = vpop.permute.xlu0 %685 }
 0x1c1   : > { %v514_v28 = vadd.f32 %v510_v32, %v493_v38  ;;  %v520_v57 = vsel %vm519_vm5, %v2591_v2, 0.0  ;;  %v691_v30 = vadd.f32 %v686_v1, %v670_v0  ;;  %v534_v50 = vmul.f32 %v2591_v2, %v2591_v2 }
 0x1c3   : > { %v2593_v58 = vadd.f32 %v516_v39, %v514_v28  ;;  %v536_v28 = vsel %vm519_vm5, %v534_v50, 0.0 }
 0x1c4   : > { %v688_v42 = vpop.permute.xlu1 %687  ;;  %v1044_v43 = vpop.permute.xlu0 %1043 }
 0x1c5   : > { %v1049_v46 = vadd.f32 %v1044_v43, %v1028_v60  ;;  %v521_v36 = vsel %vm519_vm5, %v2593_v58, 0.0  ;;  %v692_v31 = vadd.f32 %v688_v42, %v671_v14  ;;  %v535_v14 = vmul.f32 %v2593_v58, %v2593_v58 }
 0x1c6   : > { %v522_v48 = vadd.f32 %v521_v36, %v520_v57 }
 0x1c7   : > { %v1066_v3 = vadd.f32 %v2487_v61, %v1049_v46 }
 0x1c8   : > { %v1046_v5 = vpop.permute.xlu1 %1045  ;;  %v707_v37 = vpop.permute.xlu0 %706  ;;  %523 = vadd.xlane.f32.xlu0 %v522_v48 }
 0x1c9   : > { %v1050_v13 = vadd.f32 %v1046_v5, %v1029_v4  ;;  %v712_v35 = vadd.f32 %v707_v37, %v691_v30 }
 0x1cb   : > { %v1067_v49 = vadd.f32 %v2490_v63, %v1050_v13  ;;  %v2603_v16 = vadd.f32 %v715_v51, %v712_v35 }
 0x1cc   : > { %v709_v41 = vpop.permute.xlu1 %708  ;;  %v884_v10 = vpop.permute.xlu0 %883 }
 0x1cd   : > { %v713_v17 = vadd.f32 %v709_v41, %v692_v31  ;;  %v889_v61 = vadd.f32 %v884_v10, %v868_v62  ;;  %v718_v54 = vsel %vm519_vm5, %v2603_v16, 0.0  ;;  %v732_v7 = vmul.f32 %v2603_v16, %v2603_v16 }
 0x1cf   : > { %v2605_v25 = vadd.f32 %v715_v51, %v713_v17  ;;  %v734_v23 = vsel %vm519_vm5, %v732_v7, 0.0 }
 0x1d0   : > { %v886_v40 = vpop.permute.xlu1 %885  ;;  %v905_v12 = vpop.permute.xlu0 %904 }
 0x1d1   : > { %v910_v45 = vadd.f32 %v905_v12, %v889_v61  ;;  %v719_v63 = vsel %vm519_vm5, %v2605_v25, 0.0  ;;  %v733_v56 = vmul.f32 %v2605_v25, %v2605_v25  ;;  %v890_v11 = vadd.f32 %v886_v40, %v869_v33 }
 0x1d2   : > { %v720_v52 = vadd.f32 %v719_v63, %v718_v54  ;;  %v537_v33 = vsel %vm519_vm5, %v535_v14, 0.0 }
 0x1d3   : > { %v2618_v22 = vadd.f32 %v913_v44, %v910_v45  ;;  %v735_v8 = vsel %vm519_vm5, %v733_v56, 0.0  ;;  %v538_v60 = vadd.f32 %v537_v33, %v536_v28 }
 0x1d4   : > { %v907_v9 = vpop.permute.xlu1 %906  ;;  %v1082_v0 = vpop.permute.xlu0 %1081  ;;  %721 = vadd.xlane.f32.xlu0 %v720_v52  ;;  %v736_v18 = vadd.f32 %v735_v8, %v734_v23 }
 0x1d5   : > { %v911_v47 = vadd.f32 %v907_v9, %v890_v11  ;;  %v1087_v24 = vadd.f32 %v1082_v0, %v1066_v3  ;;  %v930_v15 = vmul.f32 %v2618_v22, %v2618_v22  ;;  %v916_v53 = vsel %vm519_vm5, %v2618_v22, 0.0 }
 0x1d7   : > { %v2624_v21 = vadd.f32 %v913_v44, %v911_v47  ;;  %v932_v20 = vsel %vm519_vm5, %v930_v15, 0.0 }
 0x1d8   : > { %v1084_v26 = vpop.permute.xlu1 %1083  ;;  %v1103_v19 = vpop.permute.xlu0 %1102  ;;  %737 = vadd.xlane.f32.xlu0 %v736_v18 }
 0x1d9   : > { %v1108_v62 = vadd.f32 %v1103_v19, %v1087_v24  ;;  %v917_v27 = vsel %vm519_vm5, %v2624_v21, 0.0  ;;  %v931_v55 = vmul.f32 %v2624_v21, %v2624_v21  ;;  %v1088_v34 = vadd.f32 %v1084_v26, %v1067_v49 }
 0x1da   : > { %v918_v29 = vadd.f32 %v917_v27, %v916_v53 }
 0x1db   : > { %v2638_v6 = vadd.f32 %v1111_v59, %v1108_v62  ;;  %v933_v39 = vsel %vm519_vm5, %v931_v55, 0.0 }
 0x1dc   : > { %v1105_v38 = vpop.permute.xlu1 %1104  ;;  %919 = vadd.xlane.f32.xlu1 %v918_v29  ;;  %v934_v32 = vadd.f32 %v933_v39, %v932_v20 }
 0x1dd   : > { %v1109_v1 = vadd.f32 %v1105_v38, %v1088_v34  ;;  %v1128_v43 = vmul.f32 %v2638_v6, %v2638_v6  ;;  %v1114_v46 = vsel %vm519_vm5, %v2638_v6, 0.0 }
 0x1de   : > { %935 = vadd.xlane.f32.xlu0 %v934_v32 }
 0x1df   : > { %v2643_v42 = vadd.f32 %v1111_v59, %v1109_v1  ;;  %v1130_v4 = vsel %vm519_vm5, %v1128_v43, 0.0 }
 0x1e0   : > { %539 = vadd.xlane.f32.xlu1 %v538_v60 }
 0x1e1   : > { %v1115_v57 = vsel %vm519_vm5, %v2643_v42, 0.0  ;;  %v1129_v36 = vmul.f32 %v2643_v42, %v2643_v42 }
 0x1e2   : > { %v1116_v48 = vadd.f32 %v1115_v57, %v1114_v46 }
 0x1e3   : > { %v1131_v30 = vsel %vm519_vm5, %v1129_v36, 0.0 }
 0x1e4   : > { %1117 = vadd.xlane.f32.xlu1 %v1116_v48  ;;  %v1132_v3 = vadd.f32 %v1131_v30, %v1130_v4 }
 0x1e6   : > { %1133 = vadd.xlane.f32.xlu0 %v1132_v3 }
 0x255   : > { %v524_v5 = vpop.xlane.xlu0 %523 }
 0x256   : > { %v525_v37 = vrot.slane %v524_v5, 4 }
 0x258   : > { %v526_v13 = vadd.f32 %v525_v37, %v524_v5 }
 0x25a   : > { %v527_v51 = vrot.slane %v526_v13, 2 }
 0x25c   : > { %v528_v35 = vadd.f32 %v527_v51, %v526_v13 }
 0x25e   : > { %v529_v31 = vrot.slane %v528_v35, 1 }
 0x260   : > { %v530_v49 = vadd.f32 %v529_v31, %v528_v35 }
 0x261   : > { %v722_v41 = vpop.xlane.xlu0 %721 }
 0x262   : > { %1641 = vpush %v530_v49  ;;  %v723_v10 = vrot.slane %v722_v41, 4 }
 0x264   : > { %v724_v40 = vadd.f32 %v723_v10, %v722_v41 }
 0x265   : > { %v738_v17 = vpop.xlane.xlu0 %737 }
 0x266   : > { %v739_v61 = vrot.slane %v738_v17, 4  ;;  %v725_v56 = vrot.slane %v724_v40, 2 }
 0x268   : > { %v740_v12 = vadd.f32 %v739_v61, %v738_v17  ;;  %v726_v14 = vadd.f32 %v725_v56, %v724_v40 }
 0x269   : > { %v920_v44 = vpop.xlane.xlu1 %919 }
 0x26a   : > { %v921_v54 = vrot.slane %v920_v44, 4  ;;  %v741_v11 = vrot.slane %v740_v12, 2  ;;  %v727_v55 = vrot.slane %v726_v14, 1 }
 0x26b   : > { %v936_v45 = vpop.xlane.xlu0 %935 }
 0x26c   : > { %v922_v63 = vadd.f32 %v921_v54, %v920_v44  ;;  %v937_v7 = vrot.slane %v936_v45, 4  ;;  %v742_v26 = vadd.f32 %v741_v11, %v740_v12  ;;  %v728_v60 = vadd.f32 %v727_v55, %v726_v14 }
 0x26d   : > { %v540_v52 = vpop.xlane.xlu1 %539  ;;  %v1307_v14 = vstv %s2665_s30  ;;  %s2749_s30 = sld [smem:[#allocation10 + $0x17]] }
 0x26e   : > { %v938_v8 = vadd.f32 %v937_v7, %v936_v45  ;;  %v541_v9 = vrot.slane %v540_v52, 4  ;;  %v923_v0 = vrot.slane %v922_v63, 2  ;;  %v743_v20 = vrot.slane %v742_v26, 1 }
 0x26f   : > { %v1183_v7 = vstv %s2657_s28  ;;  %s2734_s28 = sld [smem:[#allocation10 + $0xf]] }
 0x270   : > { %v939_v47 = vrot.slane %v938_v8, 2  ;;  %v542_v23 = vadd.f32 %v541_v9, %v540_v52  ;;  %v924_v19 = vadd.f32 %v923_v0, %v922_v63  ;;  %v744_v46 = vadd.f32 %v743_v20, %v742_v26 }
 0x271   : > { %v1118_v18 = vpop.xlane.xlu1 %1117  ;;  %v1153_v63 = vstv %s2655_s27  ;;  %v1214_v0 = vstv %s2659_s13  ;;  %s2736_s27 = sld [smem:[#allocation11 + $0x3]]  ;;  %v1375_v20 = vstv %s2687_s14  ;;  %s3183_s13 = sld [smem:[#allocation28_spill]] }
 0x272   : > { %v543_v24 = vrot.slane %v542_v23, 2  ;;  %v1119_v15 = vrot.slane %v1118_v18, 4  ;;  %v940_v27 = vadd.f32 %v939_v47, %v938_v8  ;;  %v925_v39 = vrot.slane %v924_v19, 1 }
 0x273   : > { %v1134_v59 = vpop.xlane.xlu0 %1133  ;;  %v1245_v47 = vstv %s2661_s1 }
 0x274   : > { %v1120_v50 = vadd.f32 %v1119_v15, %v1118_v18  ;;  %v1135_v62 = vrot.slane %v1134_v59, 4  ;;  %v544_v53 = vadd.f32 %v543_v24, %v542_v23  ;;  %v941_v28 = vrot.slane %v940_v27, 1 }
 0x275   : > { %v926_v36 = vadd.f32 %v925_v39, %v924_v19  ;;  %v1276_v23 = vstv %s2663_s4  ;;  %v1338_v24 = vstv %s2667_s16  ;;  %v1369_v15 = vstv %s2669_s17  ;;  %s2751_s17 = sld [smem:[#allocation11 + $0x5]]  ;;  %s2763_s16 = sld [smem:[#allocation10 + $0x1f]] }
 0x276   : > { %v1121_v29 = vrot.slane %v1120_v50, 2  ;;  %v1136_v33 = vadd.f32 %v1135_v62, %v1134_v59  ;;  %v545_v34 = vrot.slane %v544_v53, 1  ;;  %v942_v48 = vadd.f32 %v941_v28, %v940_v27 }
 0x277   : > { %v1159_v59 = vstv %s2671_s26  ;;  %v1189_v19 = vstv %s2673_s6  ;;  %v1251_v27 = vstv %s2677_s11  ;;  %s2755_s26 = sld [smem:[#allocation10 + $0x1b]]  ;;  %s2757_s6 = sld [smem:[#allocation11 + $0x6]]  ;;  %v1165_v39 = vstv %s2689_s24 }
 0x278   : > { %v1122_v38 = vadd.f32 %v1121_v29, %v1120_v50  ;;  %v1137_v32 = vrot.slane %v1136_v33, 2  ;;  %v546_v1 = vadd.f32 %v545_v34, %v544_v53  ;;  %v1220_v53 = vstv %s2675_s7  ;;  %s2765_s7 = sld [smem:[#allocation11 + $0x7]] }
 0x279   : > { %v1282_v29 = vstv %s2679_s15  ;;  %v1344_v34 = vstv %s2683_s0  ;;  %v1288_v28 = vstv %s2697_s19 }
 0x27a   : > { %v1138_v43 = vadd.f32 %v1137_v32, %v1136_v33  ;;  %1643 = vpush %v546_v1  ;;  %v1123_v57 = vrot.slane %v1122_v38, 1  ;;  %v1313_v33 = vstv %s2681_s3  ;;  %v1226_v32 = vstv %s2693_s23  ;;  %s1941_s3 = smov [#allocation13]  }
 0x27b   : > { %1645 = vpush %v728_v60  ;;  %3169 = sst [smem:[#allocation42_spill]] %s2751_s17  ;;  %v1257_v1 = vstv %s2695_s8  ;;  %v1319_v60 = vstv %s2701_s21  ;;  %s1854_s0 = sshll.u32 %s1941_s3, 4  ;;  %s1855_s0 = int_to_ptr.vmem [resolvable:$false] %s1854_s0 }
 0x27c   : > { %1647 = vpush %v744_v46  ;;  %v1124_v4 = vadd.f32 %v1123_v57, %v1122_v38  ;;  %v1139_v30 = vrot.slane %v1138_v43, 1  ;;  %3171 = sst [smem:[#allocation44_spill]] %s2763_s16  ;;  %v1195_v38 = vstv %s2691_s29  ;;  %v1350_v46 = vstv %s2705_s18  ;;  %s1543_s18 = sshll.u32 %s3183_s13, 7 }
 0x27d   : > { %1649 = vpush %v926_v36  ;;  %3170 = sst [smem:[#allocation43_spill]] %s2757_s6  ;;  %v1381_v57 = vstv %s2707_s12  ;;  %v1171_v36 = vstv %s2713_s5  ;;  %s3194_s21 = sld [smem:[#allocation44_spill]] }
 0x27e   : > { %1651 = vpush %v942_v48  ;;  %v1140_v3 = vadd.f32 %v1139_v30, %v1138_v43  ;;  %3172 = sst [smem:[#allocation45_spill]] %s2765_s7  ;;  %s3195_s12 = sld [smem:[#allocation23_spill]] }
 0x27f   : > { %1653 = vpush %v1124_v4  ;;  %s3206_s1 = sld [smem:[#allocation43_spill]]  ;;  %s1856_s14 = scalar_lea.vmem %s1855_s0, 4096 }
 0x280   : > { %1655 = vpush %v1140_v3  ;;  %v1201_v3 = vstv %s2719_s22  ;;  %s2942_s22 = scalar_lea.vmem [#allocation13], %s1543_s18 }
 0x281   : > { %s1413_s4 = sshll.u32 %s2942_s22, 4  ;;  %s2991_s4 = int_to_ptr.vmem [resolvable:$true] %s1413_s4 }
 0x282   : > { %s1850_s15 = scalar_lea.vmem %s2991_s4, 2048  ;;  %p1857_p3 = scmp.lt.s32.totalorder %s2991_s4, %s1855_s0 }
 0x283   : > { %p1851_p7 = scmp.ne.s32.totalorder %s2991_s4, %s1850_s15  ;;  %p1858_p13 = scmp.lt.s32.totalorder %s1856_s14, %s1850_s15 }
 0x285   : > { %p1852_p12 = pnand %p1851_p7, %p2086_p6  ;;  %p1859_p10 = por %p1858_p13, %p1857_p3 }
 0x287   : > { %p1853_p9 = pneg %p1852_p12 }
 0x289   : > { %p1860_p0 = pnand %p1859_p10, %p1853_p9 }
 0x293   : > { %s1642_s2 = spop %1641 }
 0x294   : > { %v532_v5 = vstv %s1642_s2 }
 0x295   : > { %v2685_v37 = vmul.f32 0.00390625, %v532_v5 }
 0x297   : > { %v550_v35 = vmul.f32 %v2685_v37, %v2685_v37  ;;  %v552_v4 = vsub.f32 %v2591_v2, %v2685_v37  ;;  %v553_v30 = vsub.f32 %v2593_v58, %v2685_v37 }
 0x2ab   : > { %s1644_s2 = spop %1643 }
 0x2ac   : > { %v548_v13 = vstv %s1644_s2  ;;  %s1646_s20 = spop %1645 }
 0x2ad   : > { %v549_v51 = vmul.f32 0.00390625, %v548_v13  ;;  %v730_v31 = vstv %s1646_s20  ;;  %s1648_s9 = spop %1647 }
 0x2ae   : > { %v2703_v49 = vmul.f32 0.00390625, %v730_v31  ;;  %v746_v41 = vstv %s1648_s9  ;;  %s1650_s25 = spop %1649  ;;  %v1263_v31 = vstv %s2734_s28  ;;  %s1640_s28 = sshll.u32 %s3195_s12, 11 }
 0x2af   : > { %v551_v10 = vsub.f32 %v549_v51, %v550_v35  ;;  %v928_v17 = vstv %s1650_s25  ;;  %s1652_s2 = spop %1651  ;;  %v747_v61 = vmul.f32 0.00390625, %v746_v41  ;;  %s2715_s25 = sld [smem:[#allocation11]] }
 0x2b0   : > { %v748_v40 = vmul.f32 %v2703_v49, %v2703_v49  ;;  %v2711_v44 = vmul.f32 0.00390625, %v928_v17  ;;  %s1654_s20 = spop %1653  ;;  %v944_v54 = vstv %s1652_s2  ;;  %s2727_s2 = sld [smem:[#allocation10 + $0xb]] }
 0x2b1   : > { %v554_v12 = vadd.f32 1e-05, %v551_v10  ;;  %v1126_v45 = vstv %s1654_s20  ;;  %s1656_s9 = spop %1655  ;;  %v945_v52 = vmul.f32 0.00390625, %v944_v54  ;;  %s2729_s20 = sld [smem:[#allocation11 + $0x2]]  ;;  %v750_v54 = vsub.f32 %v2603_v16, %v2703_v49 }
 0x2b2   : > { %v749_v56 = vsub.f32 %v747_v61, %v748_v40  ;;  %v946_v11 = vmul.f32 %v2711_v44, %v2711_v44  ;;  %v2725_v8 = vmul.f32 0.00390625, %v1126_v45  ;;  %v1142_v9 = vstv %s1656_s9  ;;  %s2741_s9 = sld [smem:[#allocation10 + $0x13]] }
 0x2b3   : > { %1752 = vrsqrt.f32 %v554_v12  ;;  %v1143_v50 = vmul.f32 0.00390625, %v1142_v9  ;;  %v751_v9 = vsub.f32 %v2605_v25, %v2703_v49 }
 0x2b4   : > { %v752_v18 = vadd.f32 1e-05, %v749_v56  ;;  %v947_v26 = vsub.f32 %v945_v52, %v946_v11  ;;  %v1144_v62 = vmul.f32 %v2725_v8, %v2725_v8  ;;  %v1146_v16 = vsub.f32 %v2638_v6, %v2725_v8 }
 0x2b5   : > { %3166 = sst [smem:[#allocation39_spill]] %s2715_s25  ;;  %v1147_v25 = vsub.f32 %v2643_v42, %v2725_v8 }
 0x2b6   : > { %1754 = vrsqrt.f32 %v752_v18  ;;  %v950_v55 = vadd.f32 1e-05, %v947_v26  ;;  %v1145_v43 = vsub.f32 %v1143_v50, %v1144_v62  ;;  %v1232_v51 = vstv %s2727_s2  ;;  %s3185_s19 = sld [smem:[#allocation39_spill]] }
 0x2b7   : > { %3167 = sst [smem:[#allocation40_spill]] %s2729_s20  ;;  %s2743_s20 = sld [smem:[#allocation11 + $0x4]]  ;;  %v948_v18 = vsub.f32 %v2618_v22, %v2711_v44  ;;  %v949_v26 = vsub.f32 %v2624_v21, %v2711_v44 }
 0x2b8   : > { %s3173_s11 = sld [smem:[#allocation40_spill]]  ;;  %1756 = vrsqrt.f32 %v950_v55  ;;  %v1148_v61 = vadd.f32 1e-05, %v1145_v43 }
 0x2ba   : > { %1758 = vrsqrt.f32 %v1148_v61 }
 0x2bd   : > { %3168 = sst [smem:[#allocation41_spill]] %s2743_s20  ;;  %v1753_v13 = vpop.eup %1752 }
 0x2be   : > { %v556_v10 = vmul.f32 %v1753_v13, %v552_v4  ;;  %v557_v17 = vmul.f32 %v1753_v13, %v553_v30 }
 0x2c0   : > { %v1755_v11 = vpop.eup %1754  ;;  %v1154_v50 = vmul.f32 %v1153_v63, %v556_v10  ;;  %v1155_v62 = vmul.f32 %v1153_v63, %v557_v17  ;;  %v1184_v22 = vmul.f32 %v1183_v7, %v556_v10  ;;  %v1185_v21 = vmul.f32 %v1183_v7, %v557_v17 }
 0x2c1   : > { %v1215_v49 = vmul.f32 %v1214_v0, %v556_v10  ;;  %v1216_v44 = vmul.f32 %v1214_v0, %v557_v17  ;;  %v1246_v63 = vmul.f32 %v1245_v47, %v556_v10  ;;  %v1247_v43 = vmul.f32 %v1245_v47, %v557_v17 }
 0x2c2   : > { %v1757_v55 = vpop.eup %1756  ;;  %v754_v4 = vmul.f32 %v1755_v11, %v750_v54  ;;  %v755_v30 = vmul.f32 %v1755_v11, %v751_v9  ;;  %v1277_v13 = vmul.f32 %v1276_v23, %v556_v10  ;;  %v1278_v7 = vmul.f32 %v1276_v23, %v557_v17 }
 0x2c3   : > { %v1308_v61 = vmul.f32 %v1307_v14, %v556_v10  ;;  %v1309_v0 = vmul.f32 %v1307_v14, %v557_v17  ;;  %v1339_v52 = vmul.f32 %v1338_v24, %v556_v10  ;;  %v1340_v47 = vmul.f32 %v1338_v24, %v557_v17 }
 0x2c4   : > { %v1160_v54 = vmul.f32 %v1159_v59, %v754_v4  ;;  %v1161_v11 = vmul.f32 %v1159_v59, %v755_v30  ;;  %v1370_v23 = vmul.f32 %v1369_v15, %v556_v10  ;;  %v1371_v9 = vmul.f32 %v1369_v15, %v557_v17 }
 0x2c5   : > { %v952_v14 = vmul.f32 %v1757_v55, %v948_v18  ;;  %v953_v45 = vmul.f32 %v1757_v55, %v949_v26  ;;  %v1190_v58 = vmul.f32 %v1189_v19, %v754_v4  ;;  %v1191_v24 = vmul.f32 %v1189_v19, %v755_v30 }
 0x2c6   : > { %v1221_v40 = vmul.f32 %v1220_v53, %v754_v4  ;;  %v1222_v56 = vmul.f32 %v1220_v53, %v755_v30  ;;  %v1162_v59 = vadd.f32 %v1160_v54, %v1154_v50  ;;  %v1163_v37 = vadd.f32 %v1161_v11, %v1155_v62  ;;  %v1759_v62 = vpop.eup %1758 }
 0x2c7   : > { %v1252_v10 = vmul.f32 %v1251_v27, %v754_v4  ;;  %v1253_v12 = vmul.f32 %v1251_v27, %v755_v30  ;;  %v1283_v15 = vmul.f32 %v1282_v29, %v754_v4  ;;  %v1284_v17 = vmul.f32 %v1282_v29, %v755_v30 }
 0x2c8   : > { %v1314_v18 = vmul.f32 %v1313_v33, %v754_v4  ;;  %v1315_v26 = vmul.f32 %v1313_v33, %v755_v30  ;;  %v1345_v19 = vmul.f32 %v1344_v34, %v754_v4  ;;  %v1346_v55 = vmul.f32 %v1344_v34, %v755_v30 }
 0x2c9   : > { %v1376_v53 = vmul.f32 %v1375_v20, %v754_v4  ;;  %v1377_v50 = vmul.f32 %v1375_v20, %v755_v30  ;;  %v1192_v27 = vadd.f32 %v1190_v58, %v1184_v22  ;;  %v1193_v54 = vadd.f32 %v1191_v24, %v1185_v21 }
 0x2ca   : > { %v1223_v29 = vadd.f32 %v1221_v40, %v1215_v49  ;;  %v1224_v11 = vadd.f32 %v1222_v56, %v1216_v44  ;;  %v1254_v33 = vadd.f32 %v1252_v10, %v1246_v63  ;;  %v1255_v2 = vadd.f32 %v1253_v12, %v1247_v43 }
 0x2cb   : > { %v1285_v41 = vadd.f32 %v1283_v15, %v1277_v13  ;;  %v1286_v34 = vadd.f32 %v1284_v17, %v1278_v7  ;;  %v1316_v4 = vadd.f32 %v1314_v18, %v1308_v61  ;;  %v1317_v35 = vadd.f32 %v1315_v26, %v1309_v0 }
 0x2cc   : > { %v1347_v20 = vadd.f32 %v1345_v19, %v1339_v52  ;;  %v1348_v30 = vadd.f32 %v1346_v55, %v1340_v47  ;;  %v1378_v5 = vadd.f32 %v1376_v53, %v1370_v23  ;;  %v1379_v48 = vadd.f32 %v1377_v50, %v1371_v9 }
 0x2cd   : > { %v1166_v58 = vmul.f32 %v1165_v39, %v952_v14  ;;  %v1167_v40 = vmul.f32 %v1165_v39, %v953_v45  ;;  %v1196_v56 = vmul.f32 %v1195_v38, %v952_v14  ;;  %v1197_v12 = vmul.f32 %v1195_v38, %v953_v45 }
 0x2ce   : > { %v1227_v22 = vmul.f32 %v1226_v32, %v952_v14  ;;  %v1228_v52 = vmul.f32 %v1226_v32, %v953_v45  ;;  %v1258_v44 = vmul.f32 %v1257_v1, %v952_v14  ;;  %v1259_v39 = vmul.f32 %v1257_v1, %v953_v45 }
 0x2cf   : > { %v1168_v21 = vadd.f32 %v1166_v58, %v1162_v59  ;;  %v1169_v49 = vadd.f32 %v1167_v40, %v1163_v37  ;;  %v1198_v63 = vadd.f32 %v1196_v56, %v1192_v27  ;;  %v1199_v43 = vadd.f32 %v1197_v12, %v1193_v54 }
 0x2d0   : > { %v1229_v13 = vadd.f32 %v1227_v22, %v1223_v29  ;;  %v1230_v7 = vadd.f32 %v1228_v52, %v1224_v11  ;;  %v1260_v38 = vadd.f32 %v1258_v44, %v1254_v33  ;;  %v1261_v61 = vadd.f32 %v1259_v39, %v1255_v2 }
 0x2d1   : > { %v1289_v0 = vmul.f32 %v1288_v28, %v952_v14  ;;  %v1290_v47 = vmul.f32 %v1288_v28, %v953_v45  ;;  %v1320_v32 = vmul.f32 %v1319_v60, %v952_v14  ;;  %v1321_v37 = vmul.f32 %v1319_v60, %v953_v45 }
 0x2d2   : > { %v1351_v23 = vmul.f32 %v1350_v46, %v952_v14  ;;  %v1352_v1 = vmul.f32 %v1350_v46, %v953_v45  ;;  %v1382_v2 = vmul.f32 %v1381_v57, %v952_v14  ;;  %v1383_v28 = vmul.f32 %v1381_v57, %v953_v45 }
 0x2d3   : > { %v1291_v9 = vadd.f32 %v1289_v0, %v1285_v41  ;;  %v1292_v24 = vadd.f32 %v1290_v47, %v1286_v34  ;;  %v1322_v59 = vadd.f32 %v1320_v32, %v1316_v4  ;;  %v1323_v60 = vadd.f32 %v1321_v37, %v1317_v35 }
 0x2d4   : > { %v1150_v10 = vmul.f32 %v1759_v62, %v1146_v16  ;;  %v1151_v46 = vmul.f32 %v1759_v62, %v1147_v25  ;;  %v1353_v41 = vadd.f32 %v1351_v23, %v1347_v20  ;;  %v1354_v15 = vadd.f32 %v1352_v1, %v1348_v30 }
 0x2d5   : > { %v1384_v17 = vadd.f32 %v1382_v2, %v1378_v5  ;;  %v1385_v18 = vadd.f32 %v1383_v28, %v1379_v48  ;;  %v3186_v53 = vstv %s3185_s19  ;;  %v3188_v27 = vstv %s2721_s10  ;;  %s3200_s10 = sld [smem:[#allocation41_spill]] }
 0x2d6   : > { %v1172_v14 = vmul.f32 %v1171_v36, %v1150_v10  ;;  %v1173_v57 = vmul.f32 %v1171_v36, %v1151_v46  ;;  %v1202_v35 = vmul.f32 %v1201_v3, %v1150_v10  ;;  %v1203_v6 = vmul.f32 %v1201_v3, %v1151_v46 }
 0x2d7   : > { %v1233_v42 = vmul.f32 %v1232_v51, %v1150_v10  ;;  %v1234_v8 = vmul.f32 %v1232_v51, %v1151_v46  ;;  %v1264_v48 = vmul.f32 %v1263_v31, %v1150_v10  ;;  %v1265_v5 = vmul.f32 %v1263_v31, %v1151_v46 }
 0x2d8   : > { %v1174_v36 = vadd.f32 %v1172_v14, %v1168_v21  ;;  %v1175_v45 = vadd.f32 %v1173_v57, %v1169_v49  ;;  %v1204_v16 = vadd.f32 %v1202_v35, %v1198_v63  ;;  %v1205_v25 = vadd.f32 %v1203_v6, %v1199_v43 }
 0x2d9   : > { %v1235_v26 = vadd.f32 %v1233_v42, %v1229_v13  ;;  %v1236_v19 = vadd.f32 %v1234_v8, %v1230_v7  ;;  %v1266_v3 = vadd.f32 %v1264_v48, %v1260_v38  ;;  %v1267_v55 = vadd.f32 %v1265_v5, %v1261_v61 }
 0x2da   : > { %v1178_v51 = vadd.f32 %v3186_v53, %v1174_v36  ;;  %v3187_v50 = vmov %v3186_v53  ;;  %v1208_v54 = vadd.f32 %v3188_v27, %v1204_v16  ;;  %v3189_v31 = vmov %v3188_v27 }
 0x2db   : > { %v1179_v62 = vadd.f32 %v3187_v50, %v1175_v45  ;;  %v1209_v29 = vadd.f32 %v3189_v31, %v1205_v25  ;;  %v3190_v11 = vstv %s3173_s11  ;;  %v3192_v20 = vstv %s2736_s27  ;;  %s3203_s27 = sld [smem:[#allocation42_spill]]  ;;  %s1400_s11 = scalar_lea.sflag [#allocation5], %s3183_s13 }
 0x2dc   : > { %v1239_v33 = vadd.f32 %v3190_v11, %v1235_v26  ;;  %v3191_v34 = vmov %v3190_v11  ;;  %v1270_v30 = vadd.f32 %v3192_v20, %v1266_v3  ;;  %v3193_v58 = vmov %v3192_v20  ;;  %1180 = vst.msk [vmem:[%s2942_s22] sm:$0xff] %vm519_vm5, %v1178_v51  ;;  %1590 = vst.msk [vmem:[%s2942_s22 + $0x10] sm:$0xff] %vm519_vm5, %v1208_v54 }
 0x2dd   : > { %v1240_v4 = vadd.f32 %v3191_v34, %v1236_v19  ;;  %v1271_v40 = vadd.f32 %v3193_v58, %v1267_v55  ;;  %1181 = vst.msk [vmem:[%s2942_s22 + $0x8] sm:$0xff] %vm519_vm5, %v1179_v62  ;;  %1591 = vst.msk [vmem:[%s2942_s22 + $0x18] sm:$0xff] %vm519_vm5, %v1209_v29  ;;  %v3196_v56 = vstv %s2741_s9  ;;  %v3198_v21 = vstv %s2749_s30  ;;  %s3207_s30 = sld [smem:[#allocation45_spill]] }
 0x2de   : > { %v1295_v12 = vmul.f32 %v3196_v56, %v1150_v10  ;;  %v3197_v22 = vmov %v3196_v56  ;;  %v1326_v49 = vmul.f32 %v3198_v21, %v1150_v10  ;;  %v3199_v44 = vmov %v3198_v21  ;;  %1597 = vst.msk [vmem:[%s2942_s22 + $0x20] sm:$0xff] %vm519_vm5, %v1239_v33  ;;  %1604 = vst.msk [vmem:[%s2942_s22 + $0x30] sm:$0xff] %vm519_vm5, %v1270_v30 }
 0x2df   : > { %v1296_v52 = vmul.f32 %v3197_v22, %v1151_v46  ;;  %v1327_v39 = vmul.f32 %v3199_v44, %v1151_v46  ;;  %1598 = vst.msk [vmem:[%s2942_s22 + $0x28] sm:$0xff] %vm519_vm5, %v1240_v4  ;;  %1605 = vst.msk [vmem:[%s2942_s22 + $0x38] sm:$0xff] %vm519_vm5, %v1271_v40  ;;  %v3201_v63 = vstv %s2755_s26  ;;  %v3204_v38 = vstv %s3194_s21  ;;  %s3212_s26 = sld [smem:[#allocation51_spill]] }
 0x2e0   : > { %v1357_v43 = vmul.f32 %v3201_v63, %v1150_v10  ;;  %v3202_v13 = vmov %v3201_v63  ;;  %v1388_v61 = vmul.f32 %v3204_v38, %v1150_v10  ;;  %v3205_v0 = vmov %v3204_v38 }
 0x2e1   : > { %v1358_v7 = vmul.f32 %v3202_v13, %v1151_v46  ;;  %v1389_v47 = vmul.f32 %v3205_v0, %v1151_v46  ;;  %v1297_v32 = vadd.f32 %v1295_v12, %v1291_v9  ;;  %v1298_v37 = vadd.f32 %v1296_v52, %v1292_v24 }
 0x2e2   : > { %v1328_v23 = vadd.f32 %v1326_v49, %v1322_v59  ;;  %v1329_v1 = vadd.f32 %v1327_v39, %v1323_v60  ;;  %v1359_v2 = vadd.f32 %v1357_v43, %v1353_v41  ;;  %v1390_v14 = vadd.f32 %v1388_v61, %v1384_v17 }
 0x2e3   : > { %v1360_v28 = vadd.f32 %v1358_v7, %v1354_v15  ;;  %v1391_v10 = vadd.f32 %v1389_v47, %v1385_v18  ;;  %v3208_v46 = vstv %s3200_s10  ;;  %v3210_v6 = vstv %s3203_s27 }
 0x2e4   : > { %v1301_v57 = vadd.f32 %v3208_v46, %v1297_v32  ;;  %v3209_v35 = vmov %v3208_v46  ;;  %v1332_v24 = vadd.f32 %v3210_v6, %v1328_v23  ;;  %v3211_v59 = vmov %v3210_v6 }
 0x2e5   : > { %v1302_v9 = vadd.f32 %v3209_v35, %v1298_v37  ;;  %v1333_v60 = vadd.f32 %v3211_v59, %v1329_v1  ;;  %s2989_s6 = scalar_lea.hbm %s3212_s26, %s1640_s28  ;;  %v3213_v41 = vstv %s3206_s1  ;;  %v3216_v42 = vstv %s3207_s30 }
 0x2e6   : > { %v1363_v15 = vadd.f32 %v3213_v41, %v1359_v2  ;;  %v3215_v17 = vmov %v3213_v41  ;;  %v1394_v8 = vadd.f32 %v3216_v42, %v1390_v14  ;;  %v3217_v48 = vmov %v3216_v42  ;;  %1611 = vst.msk [vmem:[%s2942_s22 + $0x40] sm:$0xff] %vm519_vm5, %v1301_v57  ;;  %1618 = vst.msk [vmem:[%s2942_s22 + $0x50] sm:$0xff] %vm519_vm5, %v1332_v24 }
 0x2e7   : > { %v1364_v18 = vadd.f32 %v3215_v17, %v1360_v28  ;;  %v1395_v5 = vadd.f32 %v3217_v48, %v1391_v10  ;;  %1612 = vst.msk [vmem:[%s2942_s22 + $0x48] sm:$0xff] %vm519_vm5, %v1302_v9  ;;  %1619 = vst.msk [vmem:[%s2942_s22 + $0x58] sm:$0xff] %vm519_vm5, %v1333_v60 }
 0x2e8   : > { %1625 = vst.msk [vmem:[%s2942_s22 + $0x60] sm:$0xff] %vm519_vm5, %v1363_v15  ;;  %1632 = vst.msk [vmem:[%s2942_s22 + $0x70] sm:$0xff] %vm519_vm5, %v1394_v8 }
 0x2e9   : > { %1626 = vst.msk [vmem:[%s2942_s22 + $0x68] sm:$0xff] %vm519_vm5, %v1364_v18  ;;  %1633 = vst.msk [vmem:[%s2942_s22 + $0x78] sm:$0xff] %vm519_vm5, %v1395_v5 }
 0x2ea   : > { %1863 = shalt.err (!%p1860_p0)
}
 0x2eb   : > { %s1864_s24 = scalar_lea.hbm %s2989_s6, 2048  ;;  %s1868_s2 = scalar_lea.hbm %s3212_s26, 4096 }
 0x2ec   : > { %p1865_p11 = scmp.ne.s32.totalorder %s2989_s6, %s1864_s24  ;;  %p1869_p5 = scmp.lt.u32.totalorder %s2989_s6, %s3212_s26 }
 0x2ed   : > { %p1870_p4 = scmp.lt.u32.totalorder %s1868_s2, %s1864_s24  ;;  %p1872_p7 = scmp.lt.u32.totalorder %s1864_s24, %s2989_s6 }
 0x2ee   : > { %p1866_p1 = pnand %p1865_p11, %p2086_p6 }
 0x2ef   : > { %p1871_p8 = por %p1870_p4, %p1869_p5 }
 0x2f0   : > { %p1867_p2 = pneg %p1866_p1 }
 0x2f1   : > { %p1873_p12 = por %p1872_p7, %p1871_p8 }
 0x2f3   : > { %p1874_p9 = pnand %p1873_p12, %p1867_p2 }
 0x2f5   : > { %1877 = shalt.err (!%p1874_p9)
}
 0x2f6   : > { %s1942_s25 = smov 128   ;;  %s1943_s5 = smov 8  }
 0x2f7   : > { %1675 = dma.vmem_to_hbm [thread:$0]  (%p2086_p6), %s2991_s4, 2048, %s2989_s6, %s1400_s11, %s1942_s25, %s1942_s25, %s1943_s5  }
 0x2f8 PF: > { %s3218_s8 = sld [smem:[#allocation19_spill]]  ;;  %s3219_s18 = sld [smem:[#allocation24_spill]] }
 0x2f9   : > { %s3220_s19 = sld [smem:[#allocation22_spill]] }
 0x2fe   : > { %s1428_s21 = sand.u32 1, %s3218_s8   ;;  %p3221_p3 = scmp.ne.s32.totalorder %s3219_s18, 0 }
 0x2ff   : > { %p3222_p13 = scmp.ge.s32.totalorder %s3220_s19, 2  ;;  %s1429_s22 = scalar_lea.sflag [#allocation5], %s1428_s21 }
 0x301   : > { %p1695_p10 = pnand %p3222_p13, %p3221_p3 }
 0x303   : > { %1911 = dma.done.wait (!%p1695_p10), %s1429_s22, 2048  }
 0x304   : > { %1913 = vsyncadd (!%p1695_p10), %s1429_s22, 4294965248  ;;  %s3223_s21 = sld [smem:[#allocation25_spill]]  ;;  %s3224_s18 = sld [smem:[#allocation20_spill]] }
 0x305   : > { %s3225_s19 = sld [smem:[#allocation21_spill]]  ;;  %s3226_s20 = sld [smem:[#allocation26_spill]] }
 0x30a   : > { %p21_p0 = scmp.ge.s32.totalorder %s3223_s21, 4  }
 0x30c   :  { %23 = sbr.rel (!%p21_p0) target bundleno = 15 (0xf), region = 112 }
 0x313   :  { %1434 = vsyncpa [#allocation4], 1 }
 0x314   :  { %1436 = vsyncpa [#allocation4 + $0x1], 1 }
 0x315   :  { %1437 = vsyncpa [#allocation5], 1 }
 0x316   :  { %1439 = vsyncpa [#allocation5 + $0x1], 1 }
 0x317   :  { %1440 = vsyncpa [#allocation6], 1 }
 0x318   :  { %1442 = vsyncpa [#allocation6 + $0x1], 1 }
 0x319   :  { %1443 = vsyncpa [#allocation9], 1 }
 0x31a   :  { %1444 = vsyncpa [#allocation12], 1 }

</bundles_post_ra>
